<compile_context>
chip_gen: v6e
topology: v6e:2x2x1
jax: 0.10.0
libtpu: 0.0.40
codegen_flags: <defaults>
</compile_context>

<pallas_src>
import functools

import jax
import jax.numpy as jnp
from jax.experimental import pallas as pl
from jax.experimental.pallas import tpu as pltpu


def _round_up(x, m):
    return ((x + m - 1) // m) * m


def polyfilter_kernel(coeffs_ref, a_ref, ideal_ref, idealt_ref,
                      pre_ref, post_ref, sig_ref, mask_ref, out_ref, *, K):
    """One user-tile of the filter. Everything user-major (TB, N), N lane-dense.

    Computes (per user row):
      s        = pre * signal
      poly     = sum_k coeffs[k] * A^k s        (Horner, via s @ A^T products)
      ideal_p  = s @ ideal @ (w * ideal^T)      (w pre-folded into idealt_ref)
      full     = post * (poly + ideal_p)
      out      = full * (1 - mask) - 1e8 * mask   (== full - mask*(full + 1e8))
    """
    # Streamed tiles arrive bf16; elementwise math kept in f32 (v5e VPU has no bf16).
    s_f32 = sig_ref[...].astype(jnp.float32) * pre_ref[...]          # (TB, N)
    a_t = a_ref[...]                                                  # (N, N) bf16, resident

    # Horner evaluation of sum_k c_k A^k s in user-major layout:
    #   (A x)^T = x^T A^T  ->  each step is one lane-dense (TB,N)@(N,N) MXU matmul
    #   with bf16 operands and a single live f32 (TB, N) accumulator.
    acc = coeffs_ref[K - 1] * s_f32
    for k in range(K - 2, -1, -1):                                    # K small & static -> unrolled
        acc = jnp.dot(acc.astype(jnp.bfloat16), a_t,
                      preferred_element_type=jnp.float32) + coeffs_ref[k] * s_f32

    # Ideal low-pass branch (ideal_weight folded into idealt_ref, d padded to 128).
    s_bf = s_f32.astype(jnp.bfloat16)
    t = jnp.dot(s_bf, ideal_ref[...], preferred_element_type=jnp.float32)        # (TB, dp)
    full = acc + jnp.dot(t.astype(jnp.bfloat16), idealt_ref[...],
                         preferred_element_type=jnp.float32)                      # (TB, N)
    full = full * post_ref[...]                                       # post-scale, broadcast (1, N)

    # _mask_predict, algebraically identical with fewer VPU ops (binary mask assumed).
    m = mask_ref[...].astype(jnp.float32)
    out_ref[...] = full - m * (full + 1e8)


def polyfilter_full_predict(norm_inter, signal, pre, post, ideal,
                            coeffs, ideal_weight, train_mask, *, max_tile_b=256):
    N, B = signal.shape
    K = int(jnp.asarray(coeffs).reshape(-1).shape[0])
    d = ideal.shape[1]
    dp = _round_up(d, 128)                     # lane-dense ideal branch

    # --- one-time layout prep (wrapper-level XLA ops, amortized) -------------
    # bf16 MXU operands, f32 accumulation inside the kernel. Signal / mask are
    # binary interaction data, so the bf16 stream is exact.
    a_t = jnp.asarray(norm_inter, jnp.float32).T.astype(jnp.bfloat16)   # kernel does s @ A^T
    ideal_f = jnp.asarray(ideal, jnp.float32)
    w = jnp.asarray(ideal_weight, jnp.float32).reshape(())
    ideal_p = jnp.pad(ideal_f, ((0, 0), (0, dp - d))).astype(jnp.bfloat16)          # (N, dp)
    idealt_w = jnp.pad(w * ideal_f.T, ((0, dp - d), (0, 0))).astype(jnp.bfloat16)   # (dp, N)
    pre_row = jnp.asarray(pre, jnp.float32).reshape(1, N)
    post_row = jnp.asarray(post, jnp.float32).reshape(1, N)
    coeffs_1d = jnp.asarray(coeffs, jnp.float32).reshape(K)
    signal_bn = jnp.asarray(signal, jnp.float32).T.astype(jnp.bfloat16)  # (B, N) user-major
    mask_bn = jnp.asarray(train_mask, jnp.float32).astype(jnp.bfloat16)

    # --- tile users: TB rows per grid step (sublane-aligned). Keep >= 2 grid
    # steps when possible so dimension_semantics=("parallel",) gives both v7x
    # TensorCores work; on v5e/v6e the extra ~0.35us/step is negligible.
    TB = min(max_tile_b, _round_up(B, 8))
    if pl.cdiv(B, TB) < 2 and TB > 8:
        TB = _round_up(TB // 2, 8)
    Bp = _round_up(B, TB)
    if Bp != B:
        signal_bn = jnp.pad(signal_bn, ((0, Bp - B), (0, 0)))
        mask_bn = jnp.pad(mask_bn, ((0, Bp - B), (0, 0)))
    num_tiles = Bp // TB

    kernel = functools.partial(polyfilter_kernel, K=K)
    smem = pl.BlockSpec(memory_space=pltpu.MemorySpace.SMEM)

    # Advisory cost for XLA scheduling: A^T / ideal are resident, counted once.
    flops = 2 * (K - 1) * Bp * N * N + 4 * Bp * N * dp + 8 * Bp * N
    bytes_accessed = (2 * N * N + 2 * 2 * N * dp + 2 * 4 * N      # resident bf16 + f32 rows
                      + 2 * 2 * Bp * N + 4 * Bp * N + 4 * K)      # streamed sig/mask + out
    cost = pl.CostEstimate(flops=flops, transcendentals=0,
                           bytes_accessed=bytes_accessed)

    # Generation-aware VMEM budget (~15% headroom), not a hard 64 MiB clamp.
    try:
        vmem_cap = int(pltpu.get_tpu_info().vmem_capacity_bytes)
    except Exception:
        vmem_cap = 64 * 2**20

    def _run(single_buffer_invariants):
        def inv_spec(shape):
            index_map = lambda i: (0,) * len(shape)
            if single_buffer_invariants:
                return pl.BlockSpec(shape, index_map, pipeline_mode=pl.Buffered(1))
            return pl.BlockSpec(shape, index_map)

        in_specs = [
            smem,                                           # coeffs  (K,)  -> SMEM scalars
            inv_spec((N, N)),                               # A^T (bf16), resident across user tiles
            inv_spec((N, dp)),                              # ideal (bf16)
            inv_spec((dp, N)),                              # w * ideal^T (bf16)
            inv_spec((1, N)),                               # pre_row (f32)
            inv_spec((1, N)),                               # post_row (f32)
            pl.BlockSpec((TB, N), lambda i: (i, 0)),        # signal tile (bf16, streamed)
            pl.BlockSpec((TB, N), lambda i: (i, 0)),        # mask tile (bf16, streamed)
        ]
        out_spec = pl.BlockSpec((TB, N), lambda i: (i, 0))

        inv_bytes = 2 * N * N + 2 * N * dp + 2 * dp * N + 2 * 4 * N
        inv_bufs = 1 if single_buffer_invariants else 2
        stream_bytes = 2 * (2 * TB * N + 2 * TB * N + 4 * TB * N)   # double-buffered sig/mask/out
        live_bytes = 6 * 4 * TB * N                                 # f32 temporaries (acc/full/s/...)
        est_vmem = inv_bufs * inv_bytes + stream_bytes + live_bytes
        vmem_limit = int(min(max(32 * 2**20, est_vmem), int(vmem_cap * 0.85)))

        out = pl.pallas_call(
            kernel,
            out_shape=jax.ShapeDtypeStruct((Bp, N), jnp.float32),
            grid=(num_tiles,),
            in_specs=in_specs,
            out_specs=out_spec,
            compiler_params=pltpu.CompilerParams(
                dimension_semantics=("parallel",),   # user tiles shard across TCs on v7x
                vmem_limit_bytes=vmem_limit),
            cost_estimate=cost,
        )(coeffs_1d, a_t, ideal_p, idealt_w, pre_row, post_row, signal_bn, mask_bn)
        return jax.block_until_ready(out)

    try:
        out = _run(True)
    except Exception:
        # Fall back to default double-buffering if Buffered(1) is not supported
        # by this jax/Mosaic build; structure is otherwise identical.
        out = _run(False)

    return out[:B]


def polyfilter_reference(norm_inter, signal, pre, post, ideal,
                         coeffs, ideal_weight, train_mask):
    """Pure-JAX f32 reference of the same forward pass (original (N, B) layout)."""
    s = signal * pre
    sk = s
    acc = coeffs[0, 0] * s
    for k in range(1, coeffs.shape[1]):
        sk = norm_inter @ sk
        acc = acc + coeffs[0, k] * sk
    full = acc.T + ideal_weight[0, 0] * (s.T @ ideal @ ideal.T)
    full = full * post
    return full * (1.0 - train_mask) - 1e8 * train_mask


if __name__ == "__main__":
    # ---- deterministic synthetic "data_handler" state -----------------------
    user_num, item_num = 32, 256          # N = item_num
    batch_users = 16                      # B
    ideal_dim = 32                        # d
    K = 4                                 # polynomial order

    key = jax.random.PRNGKey(0)
    k_inter, k_ideal = jax.random.split(key)

    # binary user-item interaction matrix R (user_num, item_num)
    R = (jax.random.uniform(k_inter, (user_num, item_num)) < 0.1).astype(jnp.float32)

    # normalized interaction: R_tilde = D_u^-1/2 R D_i^-1/2 ; norm_inter = R_tilde^T R_tilde
    du = jnp.maximum(R.sum(axis=1, keepdims=True), 1.0)
    di = jnp.maximum(R.sum(axis=0, keepdims=True), 1.0)
    R_tilde = R / jnp.sqrt(du) / jnp.sqrt(di)
    norm_inter = (R_tilde.T @ R_tilde).astype(jnp.float32)        # (N, N)

    # ideal low-pass basis (synthetic stand-in for top singular vectors)
    ideal = jax.random.normal(k_ideal, (item_num, ideal_dim), dtype=jnp.float32)
    ideal = ideal / jnp.linalg.norm(ideal, axis=0, keepdims=True)

    # pre / post degree-based scalings (args.pre_val / args.post_val analog)
    pre = (di.T ** -0.25).astype(jnp.float32)                     # (N, 1)
    post = (di ** 0.25).astype(jnp.float32)                       # (1, N)

    # polynomial coefficients (args.weights analog) and ideal weight
    coeffs = jnp.array([[1.0, 0.5, 0.25, 0.125]], dtype=jnp.float32)  # (1, K)
    ideal_weight = jnp.array([[0.3]], dtype=jnp.float32)              # (1, 1)

    # batch: picked users and their train mask
    pck_users = jnp.arange(batch_users)
    signal = R[pck_users].T.astype(jnp.float32)                   # (N, B)
    train_mask = R[pck_users].astype(jnp.float32)                 # (B, N)

    # ---- run Pallas kernel ---------------------------------------------------
    out = polyfilter_full_predict(norm_inter, signal, pre, post, ideal,
                                  coeffs, ideal_weight, train_mask)
    out = jax.block_until_ready(out)

    ref = polyfilter_reference(norm_inter, signal, pre, post, ideal,
                               coeffs, ideal_weight, train_mask)
    assert out.shape == (batch_users, item_num)
    # bf16 MXU operands / f32 accumulation -> looser tolerance than pure f32.
    assert jnp.allclose(out, ref, rtol=5e-2, atol=5e-2), "mismatch vs reference"

    print("KERNEL_OK")
</pallas_src>

<mosaic_0001>
module attributes {stable_mosaic.version = 11 : i64} {
  func.func @polyfilter_kernel(%arg0: i32, %arg1: memref<4xf32, #tpu.memory_space<smem>>, %arg2: memref<256x256xbf16, #tpu.memory_space<vmem>>, %arg3: memref<256x128xbf16, #tpu.memory_space<vmem>>, %arg4: memref<128x256xbf16, #tpu.memory_space<vmem>>, %arg5: memref<1x256xf32, #tpu.memory_space<vmem>>, %arg6: memref<1x256xf32, #tpu.memory_space<vmem>>, %arg7: memref<8x256xbf16, #tpu.memory_space<vmem>>, %arg8: memref<8x256xbf16, #tpu.memory_space<vmem>>, %arg9: memref<8x256xf32, #tpu.memory_space<vmem>>) attributes {dimension_semantics = [#tpu.dimension_semantics<parallel>], iteration_bounds = array<i64: 2>, scalar_prefetch = 0 : i64, scratch_operands = 0 : i64, tpu.core_type = #tpu.core_type<tc>, window_params = [{transform_indices = @transform_0, window_bounds = array<i64: 4>}, {pipeline_mode = #tpu.pipeline_mode<synchronous>, transform_indices = @transform_1, window_bounds = array<i64: 256, 256>}, {pipeline_mode = #tpu.pipeline_mode<synchronous>, transform_indices = @transform_2, window_bounds = array<i64: 256, 128>}, {pipeline_mode = #tpu.pipeline_mode<synchronous>, transform_indices = @transform_3, window_bounds = array<i64: 128, 256>}, {pipeline_mode = #tpu.pipeline_mode<synchronous>, transform_indices = @transform_4, window_bounds = array<i64: 1, 256>}, {pipeline_mode = #tpu.pipeline_mode<synchronous>, transform_indices = @transform_5, window_bounds = array<i64: 1, 256>}, {transform_indices = @transform_6, window_bounds = array<i64: 8, 256>}, {transform_indices = @transform_7, window_bounds = array<i64: 8, 256>}, {transform_indices = @transform_8, window_bounds = array<i64: 8, 256>}]} {
    %c0 = arith.constant 0 : index
    %c0_0 = arith.constant 0 : index
    %0 = vector.load %arg7[%c0, %c0_0] : memref<8x256xbf16, #tpu.memory_space<vmem>>, vector<8x256xbf16>
    %1 = arith.extf %0 : vector<8x256xbf16> to vector<8x256xf32>
    %c0_1 = arith.constant 0 : index
    %c0_2 = arith.constant 0 : index
    %2 = vector.load %arg5[%c0_1, %c0_2] : memref<1x256xf32, #tpu.memory_space<vmem>>, vector<1x256xf32>
    %3 = vector.broadcast %2 : vector<1x256xf32> to vector<8x256xf32>
    %4 = arith.mulf %1, %3 : vector<8x256xf32>
    %c0_3 = arith.constant 0 : index
    %c0_4 = arith.constant 0 : index
    %5 = vector.load %arg2[%c0_3, %c0_4] : memref<256x256xbf16, #tpu.memory_space<vmem>>, vector<256x256xbf16>
    %c3 = arith.constant 3 : index
    %6 = memref.load %arg1[%c3] : memref<4xf32, #tpu.memory_space<smem>>
    %7 = vector.broadcast %6 : f32 to vector<8x256xf32>
    %8 = arith.mulf %7, %4 : vector<8x256xf32>
    %9 = arith.truncf %8 : vector<8x256xf32> to vector<8x256xbf16>
    %cst = arith.constant dense<0.000000e+00> : vector<8x256xf32>
    %10 = tpu.matmul %9, %5, %cst {dimension_numbers = #tpu.dot_dimension_numbers<[1], [0], [0], [1], [0, 0, 1, 1], [], []>} : vector<8x256xbf16>, vector<256x256xbf16>, vector<8x256xf32> -> vector<8x256xf32>
    %c2 = arith.constant 2 : index
    %11 = memref.load %arg1[%c2] : memref<4xf32, #tpu.memory_space<smem>>
    %12 = vector.broadcast %11 : f32 to vector<8x256xf32>
    %13 = arith.mulf %12, %4 : vector<8x256xf32>
    %14 = arith.addf %10, %13 : vector<8x256xf32>
    %15 = arith.truncf %14 : vector<8x256xf32> to vector<8x256xbf16>
    %cst_5 = arith.constant dense<0.000000e+00> : vector<8x256xf32>
    %16 = tpu.matmul %15, %5, %cst_5 {dimension_numbers = #tpu.dot_dimension_numbers<[1], [0], [0], [1], [0, 0, 1, 1], [], []>} : vector<8x256xbf16>, vector<256x256xbf16>, vector<8x256xf32> -> vector<8x256xf32>
    %c1 = arith.constant 1 : index
    %17 = memref.load %arg1[%c1] : memref<4xf32, #tpu.memory_space<smem>>
    %18 = vector.broadcast %17 : f32 to vector<8x256xf32>
    %19 = arith.mulf %18, %4 : vector<8x256xf32>
    %20 = arith.addf %16, %19 : vector<8x256xf32>
    %21 = arith.truncf %20 : vector<8x256xf32> to vector<8x256xbf16>
    %cst_6 = arith.constant dense<0.000000e+00> : vector<8x256xf32>
    %22 = tpu.matmul %21, %5, %cst_6 {dimension_numbers = #tpu.dot_dimension_numbers<[1], [0], [0], [1], [0, 0, 1, 1], [], []>} : vector<8x256xbf16>, vector<256x256xbf16>, vector<8x256xf32> -> vector<8x256xf32>
    %c0_7 = arith.constant 0 : index
    %23 = memref.load %arg1[%c0_7] : memref<4xf32, #tpu.memory_space<smem>>
    %24 = vector.broadcast %23 : f32 to vector<8x256xf32>
    %25 = arith.mulf %24, %4 : vector<8x256xf32>
    %26 = arith.addf %22, %25 : vector<8x256xf32>
    %27 = arith.truncf %4 : vector<8x256xf32> to vector<8x256xbf16>
    %c0_8 = arith.constant 0 : index
    %c0_9 = arith.constant 0 : index
    %28 = vector.load %arg3[%c0_8, %c0_9] : memref<256x128xbf16, #tpu.memory_space<vmem>>, vector<256x128xbf16>
    %cst_10 = arith.constant dense<0.000000e+00> : vector<8x128xf32>
    %29 = tpu.matmul %27, %28, %cst_10 {dimension_numbers = #tpu.dot_dimension_numbers<[1], [0], [0], [1], [0, 0, 1, 1], [], []>} : vector<8x256xbf16>, vector<256x128xbf16>, vector<8x128xf32> -> vector<8x128xf32>
    %30 = arith.truncf %29 : vector<8x128xf32> to vector<8x128xbf16>
    %c0_11 = arith.constant 0 : index
    %c0_12 = arith.constant 0 : index
    %31 = vector.load %arg4[%c0_11, %c0_12] : memref<128x256xbf16, #tpu.memory_space<vmem>>, vector<128x256xbf16>
    %cst_13 = arith.constant dense<0.000000e+00> : vector<8x256xf32>
    %32 = tpu.matmul %30, %31, %cst_13 {dimension_numbers = #tpu.dot_dimension_numbers<[1], [0], [0], [1], [0, 0, 1, 1], [], []>} : vector<8x128xbf16>, vector<128x256xbf16>, vector<8x256xf32> -> vector<8x256xf32>
    %33 = arith.addf %26, %32 : vector<8x256xf32>
    %c0_14 = arith.constant 0 : index
    %c0_15 = arith.constant 0 : index
    %34 = vector.load %arg6[%c0_14, %c0_15] : memref<1x256xf32, #tpu.memory_space<vmem>>, vector<1x256xf32>
    %35 = vector.broadcast %34 : vector<1x256xf32> to vector<8x256xf32>
    %36 = arith.mulf %33, %35 : vector<8x256xf32>
    %c0_16 = arith.constant 0 : index
    %c0_17 = arith.constant 0 : index
    %37 = vector.load %arg8[%c0_16, %c0_17] : memref<8x256xbf16, #tpu.memory_space<vmem>>, vector<8x256xbf16>
    %38 = arith.extf %37 : vector<8x256xbf16> to vector<8x256xf32>
    %cst_18 = arith.constant 1.000000e+08 : f32
    %39 = vector.broadcast %cst_18 : f32 to vector<8x256xf32>
    %40 = arith.addf %36, %39 : vector<8x256xf32>
    %41 = arith.mulf %38, %40 : vector<8x256xf32>
    %42 = arith.subf %36, %41 : vector<8x256xf32>
    %c0_19 = arith.constant 0 : index
    %c0_20 = arith.constant 0 : index
    %43 = vector.load %arg9[%c0_19, %c0_20] : memref<8x256xf32, #tpu.memory_space<vmem>>, vector<8x256xf32>
    tpu.vector_store %arg9[%c0_19, %c0_20], %42 {strides = array<i32>} : memref<8x256xf32, #tpu.memory_space<vmem>>, vector<8x256xf32>,
    return
  }
  func.func @transform_0(%arg0: i32) -> i32 {
    %c0_i32 = arith.constant 0 : i32
    %c0_i32_0 = arith.constant 0 : i32
    return %c0_i32 : i32
  }
  func.func @transform_1(%arg0: i32) -> (i32, i32) {
    %c0_i32 = arith.constant 0 : i32
    %c0_i32_0 = arith.constant 0 : i32
    %c0_i32_1 = arith.constant 0 : i32
    return %c0_i32, %c0_i32_0 : i32, i32
  }
  func.func @transform_2(%arg0: i32) -> (i32, i32) {
    %c0_i32 = arith.constant 0 : i32
    %c0_i32_0 = arith.constant 0 : i32
    %c0_i32_1 = arith.constant 0 : i32
    return %c0_i32, %c0_i32_0 : i32, i32
  }
  func.func @transform_3(%arg0: i32) -> (i32, i32) {
    %c0_i32 = arith.constant 0 : i32
    %c0_i32_0 = arith.constant 0 : i32
    %c0_i32_1 = arith.constant 0 : i32
    return %c0_i32, %c0_i32_0 : i32, i32
  }
  func.func @transform_4(%arg0: i32) -> (i32, i32) {
    %c0_i32 = arith.constant 0 : i32
    %c0_i32_0 = arith.constant 0 : i32
    %c0_i32_1 = arith.constant 0 : i32
    return %c0_i32, %c0_i32_0 : i32, i32
  }
  func.func @transform_5(%arg0: i32) -> (i32, i32) {
    %c0_i32 = arith.constant 0 : i32
    %c0_i32_0 = arith.constant 0 : i32
    %c0_i32_1 = arith.constant 0 : i32
    return %c0_i32, %c0_i32_0 : i32, i32
  }
  func.func @transform_6(%arg0: i32) -> (i32, i32) {
    %c0_i32 = arith.constant 0 : i32
    %c0_i32_0 = arith.constant 0 : i32
    return %arg0, %c0_i32 : i32, i32
  }
  func.func @transform_7(%arg0: i32) -> (i32, i32) {
    %c0_i32 = arith.constant 0 : i32
    %c0_i32_0 = arith.constant 0 : i32
    return %arg0, %c0_i32 : i32, i32
  }
  func.func @transform_8(%arg0: i32) -> (i32, i32) {
    %c0_i32 = arith.constant 0 : i32
    %c0_i32_0 = arith.constant 0 : i32
    return %arg0, %c0_i32 : i32, i32
  }
}

module attributes {stable_mosaic.version = 11 : i64} {
  func.func @polyfilter_kernel(%arg0: i32, %arg1: memref<4xf32, #tpu.memory_space<smem>>, %arg2: memref<256x256xbf16, #tpu.memory_space<vmem>>, %arg3: memref<256x128xbf16, #tpu.memory_space<vmem>>, %arg4: memref<128x256xbf16, #tpu.memory_space<vmem>>, %arg5: memref<1x256xf32, #tpu.memory_space<vmem>>, %arg6: memref<1x256xf32, #tpu.memory_space<vmem>>, %arg7: memref<8x256xbf16, #tpu.memory_space<vmem>>, %arg8: memref<8x256xbf16, #tpu.memory_space<vmem>>, %arg9: memref<8x256xf32, #tpu.memory_space<vmem>>) attributes {dimension_semantics = [#tpu.dimension_semantics<parallel>], iteration_bounds = array<i64: 2>, scalar_prefetch = 0 : i64, scratch_operands = 0 : i64, tpu.core_type = #tpu.core_type<tc>, window_params = [{transform_indices = @transform_0, window_bounds = array<i64: 4>}, {pipeline_mode = #tpu.pipeline_mode<synchronous>, transform_indices = @transform_1, window_bounds = array<i64: 256, 256>}, {pipeline_mode = #tpu.pipeline_mode<synchronous>, transform_indices = @transform_2, window_bounds = array<i64: 256, 128>}, {pipeline_mode = #tpu.pipeline_mode<synchronous>, transform_indices = @transform_3, window_bounds = array<i64: 128, 256>}, {pipeline_mode = #tpu.pipeline_mode<synchronous>, transform_indices = @transform_4, window_bounds = array<i64: 1, 256>}, {pipeline_mode = #tpu.pipeline_mode<synchronous>, transform_indices = @transform_5, window_bounds = array<i64: 1, 256>}, {transform_indices = @transform_6, window_bounds = array<i64: 8, 256>}, {transform_indices = @transform_7, window_bounds = array<i64: 8, 256>}, {transform_indices = @transform_8, window_bounds = array<i64: 8, 256>}]} {
    %c0 = arith.constant 0 : index
    %c0_0 = arith.constant 0 : index
    %0 = vector.load %arg7[%c0, %c0_0] : memref<8x256xbf16, #tpu.memory_space<vmem>>, vector<8x256xbf16>
    %1 = arith.extf %0 : vector<8x256xbf16> to vector<8x256xf32>
    %c0_1 = arith.constant 0 : index
    %c0_2 = arith.constant 0 : index
    %2 = vector.load %arg5[%c0_1, %c0_2] : memref<1x256xf32, #tpu.memory_space<vmem>>, vector<1x256xf32>
    %3 = vector.broadcast %2 : vector<1x256xf32> to vector<8x256xf32>
    %4 = arith.mulf %1, %3 : vector<8x256xf32>
    %c0_3 = arith.constant 0 : index
    %c0_4 = arith.constant 0 : index
    %5 = vector.load %arg2[%c0_3, %c0_4] : memref<256x256xbf16, #tpu.memory_space<vmem>>, vector<256x256xbf16>
    %c3 = arith.constant 3 : index
    %6 = memref.load %arg1[%c3] : memref<4xf32, #tpu.memory_space<smem>>
    %7 = vector.broadcast %6 : f32 to vector<8x256xf32>
    %8 = arith.mulf %7, %4 : vector<8x256xf32>
    %9 = arith.truncf %8 : vector<8x256xf32> to vector<8x256xbf16>
    %cst = arith.constant dense<0.000000e+00> : vector<8x256xf32>
    %10 = tpu.matmul %9, %5, %cst {dimension_numbers = #tpu.dot_dimension_numbers<[1], [0], [0], [1], [0, 0, 1, 1], [], []>} : vector<8x256xbf16>, vector<256x256xbf16>, vector<8x256xf32> -> vector<8x256xf32>
    %c2 = arith.constant 2 : index
    %11 = memref.load %arg1[%c2] : memref<4xf32, #tpu.memory_space<smem>>
    %12 = vector.broadcast %11 : f32 to vector<8x256xf32>
    %13 = arith.mulf %12, %4 : vector<8x256xf32>
    %14 = arith.addf %10, %13 : vector<8x256xf32>
    %15 = arith.truncf %14 : vector<8x256xf32> to vector<8x256xbf16>
    %cst_5 = arith.constant dense<0.000000e+00> : vector<8x256xf32>
    %16 = tpu.matmul %15, %5, %cst_5 {dimension_numbers = #tpu.dot_dimension_numbers<[1], [0], [0], [1], [0, 0, 1, 1], [], []>} : vector<8x256xbf16>, vector<256x256xbf16>, vector<8x256xf32> -> vector<8x256xf32>
    %c1 = arith.constant 1 : index
    %17 = memref.load %arg1[%c1] : memref<4xf32, #tpu.memory_space<smem>>
    %18 = vector.broadcast %17 : f32 to vector<8x256xf32>
    %19 = arith.mulf %18, %4 : vector<8x256xf32>
    %20 = arith.addf %16, %19 : vector<8x256xf32>
    %21 = arith.truncf %20 : vector<8x256xf32> to vector<8x256xbf16>
    %cst_6 = arith.constant dense<0.000000e+00> : vector<8x256xf32>
    %22 = tpu.matmul %21, %5, %cst_6 {dimension_numbers = #tpu.dot_dimension_numbers<[1], [0], [0], [1], [0, 0, 1, 1], [], []>} : vector<8x256xbf16>, vector<256x256xbf16>, vector<8x256xf32> -> vector<8x256xf32>
    %c0_7 = arith.constant 0 : index
    %23 = memref.load %arg1[%c0_7] : memref<4xf32, #tpu.memory_space<smem>>
    %24 = vector.broadcast %23 : f32 to vector<8x256xf32>
    %25 = arith.mulf %24, %4 : vector<8x256xf32>
    %26 = arith.addf %22, %25 : vector<8x256xf32>
    %27 = arith.truncf %4 : vector<8x256xf32> to vector<8x256xbf16>
    %c0_8 = arith.constant 0 : index
    %c0_9 = arith.constant 0 : index
    %28 = vector.load %arg3[%c0_8, %c0_9] : memref<256x128xbf16, #tpu.memory_space<vmem>>, vector<256x128xbf16>
    %cst_10 = arith.constant dense<0.000000e+00> : vector<8x128xf32>
    %29 = tpu.matmul %27, %28, %cst_10 {dimension_numbers = #tpu.dot_dimension_numbers<[1], [0], [0], [1], [0, 0, 1, 1], [], []>} : vector<8x256xbf16>, vector<256x128xbf16>, vector<8x128xf32> -> vector<8x128xf32>
    %30 = arith.truncf %29 : vector<8x128xf32> to vector<8x128xbf16>
    %c0_11 = arith.constant 0 : index
    %c0_12 = arith.constant 0 : index
    %31 = vector.load %arg4[%c0_11, %c0_12] : memref<128x256xbf16, #tpu.memory_space<vmem>>, vector<128x256xbf16>
    %cst_13 = arith.constant dense<0.000000e+00> : vector<8x256xf32>
    %32 = tpu.matmul %30, %31, %cst_13 {dimension_numbers = #tpu.dot_dimension_numbers<[1], [0], [0], [1], [0, 0, 1, 1], [], []>} : vector<8x128xbf16>, vector<128x256xbf16>, vector<8x256xf32> -> vector<8x256xf32>
    %33 = arith.addf %26, %32 : vector<8x256xf32>
    %c0_14 = arith.constant 0 : index
    %c0_15 = arith.constant 0 : index
    %34 = vector.load %arg6[%c0_14, %c0_15] : memref<1x256xf32, #tpu.memory_space<vmem>>, vector<1x256xf32>
    %35 = vector.broadcast %34 : vector<1x256xf32> to vector<8x256xf32>
    %36 = arith.mulf %33, %35 : vector<8x256xf32>
    %c0_16 = arith.constant 0 : index
    %c0_17 = arith.constant 0 : index
    %37 = vector.load %arg8[%c0_16, %c0_17] : memref<8x256xbf16, #tpu.memory_space<vmem>>, vector<8x256xbf16>
    %38 = arith.extf %37 : vector<8x256xbf16> to vector<8x256xf32>
    %cst_18 = arith.constant 1.000000e+08 : f32
    %39 = vector.broadcast %cst_18 : f32 to vector<8x256xf32>
    %40 = arith.addf %36, %39 : vector<8x256xf32>
    %41 = arith.mulf %38, %40 : vector<8x256xf32>
    %42 = arith.subf %36, %41 : vector<8x256xf32>
    %c0_19 = arith.constant 0 : index
    %c0_20 = arith.constant 0 : index
    %43 = vector.load %arg9[%c0_19, %c0_20] : memref<8x256xf32, #tpu.memory_space<vmem>>, vector<8x256xf32>
    tpu.vector_store %arg9[%c0_19, %c0_20], %42 {strides = array<i32>} : memref<8x256xf32, #tpu.memory_space<vmem>>, vector<8x256xf32>,
    return
  }
  func.func @transform_0(%arg0: i32) -> i32 {
    %c0_i32 = arith.constant 0 : i32
    %c0_i32_0 = arith.constant 0 : i32
    return %c0_i32 : i32
  }
  func.func @transform_1(%arg0: i32) -> (i32, i32) {
    %c0_i32 = arith.constant 0 : i32
    %c0_i32_0 = arith.constant 0 : i32
    %c0_i32_1 = arith.constant 0 : i32
    return %c0_i32, %c0_i32_0 : i32, i32
  }
  func.func @transform_2(%arg0: i32) -> (i32, i32) {
    %c0_i32 = arith.constant 0 : i32
    %c0_i32_0 = arith.constant 0 : i32
    %c0_i32_1 = arith.constant 0 : i32
    return %c0_i32, %c0_i32_0 : i32, i32
  }
  func.func @transform_3(%arg0: i32) -> (i32, i32) {
    %c0_i32 = arith.constant 0 : i32
    %c0_i32_0 = arith.constant 0 : i32
    %c0_i32_1 = arith.constant 0 : i32
    return %c0_i32, %c0_i32_0 : i32, i32
  }
  func.func @transform_4(%arg0: i32) -> (i32, i32) {
    %c0_i32 = arith.constant 0 : i32
    %c0_i32_0 = arith.constant 0 : i32
    %c0_i32_1 = arith.constant 0 : i32
    return %c0_i32, %c0_i32_0 : i32, i32
  }
  func.func @transform_5(%arg0: i32) -> (i32, i32) {
    %c0_i32 = arith.constant 0 : i32
    %c0_i32_0 = arith.constant 0 : i32
    %c0_i32_1 = arith.constant 0 : i32
    return %c0_i32, %c0_i32_0 : i32, i32
  }
  func.func @transform_6(%arg0: i32) -> (i32, i32) {
    %c0_i32 = arith.constant 0 : i32
    %c0_i32_0 = arith.constant 0 : i32
    return %arg0, %c0_i32 : i32, i32
  }
  func.func @transform_7(%arg0: i32) -> (i32, i32) {
    %c0_i32 = arith.constant 0 : i32
    %c0_i32_0 = arith.constant 0 : i32
    return %arg0, %c0_i32 : i32, i32
  }
  func.func @transform_8(%arg0: i32) -> (i32, i32) {
    %c0_i32 = arith.constant 0 : i32
    %c0_i32_0 = arith.constant 0 : i32
    return %arg0, %c0_i32 : i32, i32
  }
}

</mosaic_0001>

<bundles_post_ra>
// kernel: tpu_custom_call.1
= control target key start
LH: loop header
LB: loop body
LE: loop exit
PB: predicated region body
PF: predicated region fallthrough
CT: control target
= control target key end

     0   :  { %s2220_s0 = inlined_call_operand.hbm [shape: f32[4], index: 0, kind: input, shape index: {}]   ;;  %s2221_s1 = inlined_call_operand.hbm [shape: bf16[256,256], index: 1, kind: input, shape index: {}]   ;;  %s2222_s2 = inlined_call_operand.hbm [shape: bf16[256,128], index: 2, kind: input, shape index: {}]   ;;  %s2223_s3 = inlined_call_operand.hbm [shape: bf16[128,256], index: 3, kind: input, shape index: {}]   ;;  %s2224_s4 = inlined_call_operand.vmem [shape: f32[1,256], index: 4, kind: input, shape index: {}]   ;;  %s2225_s5 = inlined_call_operand.vmem [shape: f32[1,256], index: 5, kind: input, shape index: {}]   ;;  %s2226_s6 = inlined_call_operand.hbm [shape: bf16[16,256], index: 6, kind: input, shape index: {}]   ;;  %s2227_s7 = inlined_call_operand.hbm [shape: bf16[16,256], index: 7, kind: input, shape index: {}]   ;;  %s2228_s8 = inlined_call_operand.hbm [shape: f32[16,256], index: 8, kind: output, shape index: {}]  }
   0x1   :  { %2240 = sst [smem:[#allocation22_spill]] %s2222_s2 }
   0x2   :  { %2241 = sst [smem:[#allocation23_spill]] %s2226_s6 }
   0x3   :  { %13 = vsyncpa [#allocation5], 0 }
   0x4   :  { %14 = vsyncpa [#allocation3], 0 }
   0x5   :  { %15 = vsyncpa [#allocation8], 0 }
   0x6   :  { %16 = vsyncpa [#allocation11], 0 }
   0x7   :  { %18 = vsyncpa [#allocation11 + $0x1], 0 }
   0x8   :  { %19 = vsyncpa [#allocation4], 0 }
   0x9   :  { %21 = vsyncpa [#allocation4 + $0x1], 0  ;;  %s1834_s27 = smov 0   ;;  %s1836_s28 = smov 0  }
   0xa   :  { %s1838_s29 = smov 0   ;;  %s1840_s30 = smov 0  }
   0xb LB: > { %2242 = sst [smem:[#allocation19_spill]] %s1771_s29  ;;  %s1777_s9 = smov [#allocation7]   ;;  %s1775_s30 = sphi %s1840_s30, %s2268_s30   ;;  %s1771_s29 = sphi %s1838_s29, %s2270_s29   ;;  %s1767_s28 = sphi %s1836_s28, %s2272_s28   ;;  %s1763_s27 = sphi %s1834_s27, %s2271_s27  }
   0xc   : > { %s270_s10 = sshll.u32 %s1777_s9, 4  ;;  %s1855_s11 = sadd.s32 4294967295, %s1775_s30   ;;  %s271_s10 = int_to_ptr.vmem [resolvable:$true] %s270_s10 }
   0xd   : > { %p1252_p0 = scmp.ge.s32.totalorder %s1775_s30, 1  ;;  %p2232_p1 = scmp.eq.s32.totalorder %s1855_s11, 0 }
   0xe   : > { %p236_p2 = scmp.lt.s32.totalorder %s1775_s30, 3  ;;  %s1251_s14 = sadd.s32 4294967294, %s1775_s30  }
   0xf   : > { %s1565_s15 = scalar_lea.vmem %s271_s10, 2048  ;;  %p1573_p11 = scmp.lt.s32.totalorder %s271_s10, %s271_s10 }
  0x10   : > { %p1860_p3 = pnand %p1252_p0, %p236_p2  ;;  %p1566_p8 = scmp.ne.s32.totalorder %s271_s10, %s1565_s15 }
  0x11   : > { %p1574_p12 = scmp.lt.s32.totalorder %s1565_s15, %s1565_s15 }
  0x12   : > { %s2243_s12 = scalar_select %p1860_p3, 1, 0 }
  0x13   : > { %p1391_p5 = pneg %p1860_p3  ;;  %p1575_p13 = por %p1574_p12, %p1573_p11 }
  0x15   : > { %p1869_p6 = pnand %p1391_p5, %p2232_p1 }
  0x17   : > { %s2244_s13 = scalar_select %p1869_p6, 1, 0 }
  0x18   : > { %p2229_p7 = pneg %p1869_p6 }
  0x1a   : > { %p1568_p9 = pnand %p1566_p8, %p2229_p7 }
  0x1c   : > { %p1569_p10 = pneg %p1568_p9 }
  0x1e   : > { %p1576_p0 = pnand %p1575_p13, %p1569_p10 }
  0x20   : > { %1579 = shalt.err (!%p1576_p0)
}
  0x21   : > { %s1778_s16 = smov 64   ;;  %s1779_s17 = smov 4  }
  0x22   : > { %s2245_s2 = sld [smem:[#allocation22_spill]]  ;;  %s1885_s20 = sadd.s32 1, %s1775_s30  }
  0x23   : > { %2246 = sst [smem:[#allocation20_spill]] %s1885_s20  ;;  %s160_s21 = sadd.s32 1, %s1771_s29 }
  0x24   : > { %s157_s22 = ssub.s32 %s1775_s30, %s1885_s20  ;;  %p167_p2 = scmp.ne.s32.totalorder %s1771_s29, %s1767_s28 }
  0x25   : > { %p158_p5 = scmp.eq.s32.totalorder %s157_s22, 0  ;;  %p168_p8 = scmp.eq.s32.totalorder %s1775_s30, 0 }
  0x26   : > { %p173_p9 = scmp.ne.s32.totalorder %s1767_s28, %s1763_s27  ;;  %p223_p10 = scmp.eq.s32.totalorder %s1855_s11, 1 }
  0x27   : > { %s1897_s23 = scalar_select %p158_p5, %s1771_s29, %s160_s21  }
  0x28   : > { %1400 = dma.hbm_to_vmem [thread:$0]  (!%p1869_p6), %s2245_s2, 2048, %s271_s10, [#allocation8], %s1778_s16, %s1778_s16, %s1779_s17  }
  0x29   : > { %2247 = sst [smem:[#allocation21_spill]] %s1897_s23  ;;  %p169_p11 = por %p168_p8, %p167_p2 }
  0x2a   : > { %p1901_p12 = por %p2232_p1, %p173_p9  ;;  %p1905_p13 = por %p223_p10, %p167_p2 }
  0x2b   : > { %p229_p0 = scmp.eq.s32.totalorder %s1251_s14, 1  ;;  %p1419_p4 = scmp.lt.s32.totalorder %s1775_s30, 2 }
  0x2c   : > { %s2248_s24 = scalar_select %p1901_p12, 1, 0 }
  0x2d   : > { %s2249_s25 = scalar_select %p1905_p13, 1, 0 }
  0x2e   : > { %s303_s26 = sand.u32 1, %s1775_s30   ;;  %p1911_p7 = por %p229_p0, %p173_p9 }
  0x2f   : > { %s305_s10 = sand.u32 1, %s1771_s29   ;;  %s2230_s15 = sshll.u32 %s1775_s30, 7 }
  0x30   : > { %s2250_s9 = scalar_select %p1911_p7, 1, 0 }
  0x31   : > { %s1917_s16 = sshll.u32 %s305_s10, 3  ;;  %s2251_s6 = sld [smem:[#allocation23_spill]] }
  0x32   : > { %p1926_p2 = pnand %p1419_p4, %p169_p11  ;;  %s307_s21 = scalar_lea.vmem [#allocation10], %s1917_s16 }
  0x33   : > { %s315_s22 = sshll.u32 %s307_s21, 4  ;;  %s1931_s10 = scalar_lea.sflag [#allocation11], %s303_s26  ;;  %s316_s22 = int_to_ptr.vmem [resolvable:$true] %s315_s22 }
  0x34   : > { %p1582_p8 = pneg %p1926_p2 }
  0x37   : > { %s1924_s19 = scalar_lea.hbm %s2251_s6, %s2230_s15  ;;  %s1585_s15 = scalar_lea.hbm %s2251_s6, 256 }
  0x38   : > { %s1580_s2 = scalar_lea.hbm %s1924_s19, 128  ;;  %p1586_p4 = scmp.lt.s32.totalorder %s1924_s19, %s2251_s6 }
  0x39   : > { %p1581_p5 = scmp.ne.s32.totalorder %s1924_s19, %s1580_s2  ;;  %p1587_p11 = scmp.lt.s32.totalorder %s1585_s15, %s1580_s2 }
  0x3b   : > { %p1583_p9 = pnand %p1582_p8, %p1581_p5  ;;  %p1588_p0 = por %p1587_p11, %p1586_p4 }
  0x3d   : > { %p1584_p10 = pneg %p1583_p9 }
  0x3f   : > { %p1589_p1 = pnand %p1588_p0, %p1584_p10 }
  0x41   : > { %1592 = shalt.err (!%p1589_p1)
}
  0x42   : > { %s1593_s26 = scalar_lea.vmem %s316_s22, 128  ;;  %s1780_s21 = smov [#allocation10]  }
  0x43   : > { %p1594_p7 = scmp.ne.s32.totalorder %s316_s22, %s1593_s26  ;;  %s1598_s20 = sshll.u32 %s1780_s21, 4  ;;  %s1599_s20 = int_to_ptr.vmem [resolvable:$false] %s1598_s20 }
  0x44   : > { %s1600_s17 = scalar_lea.vmem %s1599_s20, 256  ;;  %p1601_p9 = scmp.lt.s32.totalorder %s316_s22, %s1599_s20 }
  0x45   : > { %p1596_p13 = pnand %p1594_p7, %p1582_p8  ;;  %p1602_p12 = scmp.lt.s32.totalorder %s1600_s17, %s1593_s26 }
  0x47   : > { %p1597_p5 = pneg %p1596_p13  ;;  %p1603_p3 = por %p1602_p12, %p1601_p9 }
  0x49   : > { %p1604_p6 = pnand %p1603_p3, %p1597_p5 }
  0x4b   : > { %1607 = shalt.err (!%p1604_p6)
}
  0x4c   : > { %1407 = dma.hbm_to_vmem [thread:$0]  (!%p1926_p2), %s1924_s19, 128, %s316_s22, %s1931_s10  }
  0x4d   : > { %s2253_s2 = sshll.u32 %s1775_s30, 7  ;;  %s1781_s18 = smov [#allocation2]  }
  0x4e   : > { %s1959_s15 = scalar_lea.hbm %s2227_s7, %s2253_s2  ;;  %p2254_p1 = scmp.ne.s32.totalorder %s2244_s13, 0 }
  0x4f   : > { %s1782_s21 = smov [#allocation6]  }
  0x50   : > { %1394 = dma.hbm_to_smem (!%p2254_p1), %s2220_s0, 16, %s1781_s18, [#allocation5]  }
  0x51   : > { %s257_s17 = sshll.u32 %s1782_s21, 4  ;;  %p2255_p6 = pneg %p2254_p1  ;;  %s258_s17 = int_to_ptr.vmem [resolvable:$true] %s257_s17 }
  0x52   : > { %s1630_s6 = scalar_lea.vmem %s258_s17, 4096  ;;  %p1638_p13 = scmp.lt.s32.totalorder %s258_s17, %s258_s17 }
  0x53   : > { %p1631_p3 = scmp.ne.s32.totalorder %s258_s17, %s1630_s6  ;;  %p1639_p10 = scmp.lt.s32.totalorder %s1630_s6, %s1630_s6 }
  0x55   : > { %p1633_p7 = pnand %p1631_p3, %p2255_p6  ;;  %p1640_p4 = por %p1639_p10, %p1638_p13 }
  0x57   : > { %p1634_p12 = pneg %p1633_p7 }
  0x59   : > { %p1641_p11 = pnand %p1640_p4, %p1634_p12 }
  0x5b   : > { %1644 = shalt.err (!%p1641_p11)
}
  0x5c   : > { %s1783_s19 = smov 128   ;;  %s1784_s22 = smov 8  }
  0x5d   : > { %1397 = dma.hbm_to_vmem [thread:$0]  (!%p2254_p1), %s2221_s1, 4096, %s258_s17, [#allocation3], %s1783_s19, %s1783_s19, %s1784_s22  }
  0x5e   : > { %s1785_s23 = smov [#allocation9]   ;;  %s326_s20 = scalar_lea.vmem [#allocation12], %s1917_s16 }
  0x5f   : > { %s283_s18 = sshll.u32 %s1785_s23, 4  ;;  %s334_s26 = sshll.u32 %s326_s20, 4  ;;  %s284_s18 = int_to_ptr.vmem [resolvable:$true] %s283_s18  ;;  %s1975_s26 = int_to_ptr.vmem [resolvable:$true] %s334_s26 }
  0x60   : > { %s1656_s6 = scalar_lea.vmem %s284_s18, 2048  ;;  %p2256_p5 = pmov %p2255_p6 }
  0x61   : > { %p1657_p0 = scmp.ne.s32.totalorder %s284_s18, %s1656_s6  ;;  %p1664_p6 = scmp.lt.s32.totalorder %s284_s18, %s284_s18 }
  0x62   : > { %p1665_p7 = scmp.lt.s32.totalorder %s1656_s6, %s1656_s6 }
  0x63   : > { %p1659_p9 = pnand %p1657_p0, %p2256_p5 }
  0x64   : > { %p1666_p12 = por %p1665_p7, %p1664_p6 }
  0x65   : > { %p1660_p3 = pneg %p1659_p9 }
  0x67   : > { %p1667_p13 = pnand %p1666_p12, %p1660_p3 }
  0x69   : > { %1670 = shalt.err (!%p1667_p13)
}
  0x6a   : > { %1403 = dma.hbm_to_vmem [thread:$0]  (!%p2254_p1), %s2223_s3, 2048, %s284_s18, [#allocation8], %s1783_s19, %s1783_s19, %s1784_s22  }
  0x6b   : > { %s1671_s16 = scalar_lea.hbm %s1959_s15, 128  ;;  %s1676_s23 = scalar_lea.hbm %s2227_s7, 256 }
  0x6c   : > { %p1672_p10 = scmp.ne.s32.totalorder %s1959_s15, %s1671_s16  ;;  %p1677_p0 = scmp.lt.s32.totalorder %s1959_s15, %s2227_s7 }
  0x6d   : > { %p1678_p5 = scmp.lt.s32.totalorder %s1676_s23, %s1671_s16 }
  0x6e   : > { %p1674_p4 = pnand %p1672_p10, %p1582_p8 }
  0x6f   : > { %p1679_p9 = por %p1678_p5, %p1677_p0 }
  0x70   : > { %p1675_p11 = pneg %p1674_p4 }
  0x72   : > { %p1680_p3 = pnand %p1679_p9, %p1675_p11 }
  0x74   : > { %1683 = shalt.err (!%p1680_p3)
}
  0x75   : > { %s1684_s19 = scalar_lea.vmem %s1975_s26, 128  ;;  %s1786_s22 = smov [#allocation12]  }
  0x76   : > { %p1685_p1 = scmp.ne.s32.totalorder %s1975_s26, %s1684_s19  ;;  %s1689_s18 = sshll.u32 %s1786_s22, 4  ;;  %s1690_s18 = int_to_ptr.vmem [resolvable:$false] %s1689_s18 }
  0x77   : > { %s1691_s6 = scalar_lea.vmem %s1690_s18, 256  ;;  %p1692_p12 = scmp.lt.s32.totalorder %s1975_s26, %s1690_s18 }
  0x78   : > { %p1687_p6 = pnand %p1685_p1, %p1582_p8  ;;  %p1693_p13 = scmp.lt.s32.totalorder %s1691_s6, %s1684_s19 }
  0x7a   : > { %p1688_p7 = pneg %p1687_p6  ;;  %p1694_p10 = por %p1693_p13, %p1692_p12 }
  0x7c   : > { %p1695_p4 = pnand %p1694_p10, %p1688_p7 }
  0x7e   : > { %1698 = shalt.err (!%p1695_p4)
}
  0x7f   : > { %1410 = dma.hbm_to_vmem [thread:$0]  (!%p1926_p2), %s1959_s15, 128, %s1975_s26, %s1931_s10  }
  0x80   : > { %p2257_p11 = scmp.ne.s32.totalorder %s2243_s12, 0 }
  0x81   : > { %p2258_p8 = scmp.eq.s32.totalorder (!%p2257_p11), %s1855_s11, 0 }
  0x82   : > { %343 = sbr.rel (%p2257_p11) target bundleno = 864 (0x360), region = 52 }
  0x87   : > { %1742 = dma.done.wait (%p2258_p8), [#allocation5], 16   ;;  %p2259_p0 = pmov %p2258_p8 }
  0x89   : > { %1744 = vsyncadd (%p2259_p0), [#allocation5], 4294967280  ;;  %p2260_p5 = pmov %p2259_p0 }
  0x8a   : > { %p2261_p9 = pmov %p2259_p0 }
  0x8b   : > { %1746 = dma.done.wait (%p2260_p5), [#allocation3], 4096  }
  0x8c   : > { %1748 = vsyncadd (%p2261_p9), [#allocation3], 4294963200  ;;  %p2262_p3 = pmov %p2259_p0 }
  0x8d   : > { %p2263_p2 = pmov %p2259_p0 }
  0x8e   : > { %1750 = dma.done.wait (%p2262_p3), [#allocation8], 4096  }
  0x8f   : > { %1752 = vsyncadd (%p2263_p2), [#allocation8], 4294963200  ;;  %s361_s12 = sand.u32 1, %s1855_s11   ;;  %s2024_s14 = sand.u32 1, %s1767_s28  }
  0x90   : > { %s1269_s10 = sshll.u32 %s2024_s14, 3  ;;  %s362_s15 = scalar_lea.sflag [#allocation11], %s361_s12 }
  0x91   : > { %s2027_s26 = scalar_lea.vmem [#allocation10], %s1269_s10  ;;  %p2264_p1 = scmp.ne.s32.totalorder %s2248_s24, 0 }
  0x93   : > { %1754 = dma.done.wait (%p2264_p1), %s362_s15, 256  }
  0x94   : > { %1756 = vsyncadd (%p2264_p1), %s362_s15, 4294967040  ;;  %s2033_s21 = scalar_lea.vmem [#allocation12], %s1269_s10 }
  0x95   : > { %379 = sfence }
  0x96   : > { %v2035_v0 = vld [vmem:[#allocation6 + $0x74] ss:$8 sps:$4 sm:$0xff]   ;;  %v2037_v1 = vld [vmem:[#allocation6 + $0x70] ss:$8 sps:$4 sm:$0xff]   ;;  %v2040_v2 = vld [vmem:[#allocation6 + $0x64] ss:$8 sps:$4 sm:$0xff]   ;;  %v419_v7 = vlaneseq }
  0x97   : > { %633 = vmatprep.subr.bf16.mxu0 %v2035_v0  ;;  %680 = vmatprep.subr.bf16.mxu1 %v2035_v0  ;;  %v2044_v3 = vld [vmem:[#allocation6 + $0x60] ss:$8 sps:$4 sm:$0xff]   ;;  %v2048_v4 = vld [vmem:[#allocation6 + $0x54] ss:$8 sps:$4 sm:$0xff]   ;;  %v2052_v5 = vld [vmem:[#allocation6 + $0x50] ss:$8 sps:$4 sm:$0xff]  }
  0x98   : > { %634 = vmatpush1.bf16.msra.mxu0 %v2037_v1  ;;  %681 = vmatpush1.bf16.msra.mxu1 %v2037_v1  ;;  %v2056_v6 = vld [vmem:[#allocation6 + $0x44] ss:$8 sps:$4 sm:$0xff]   ;;  %v2060_v8 = vld [vmem:[#allocation6 + $0x40] ss:$8 sps:$4 sm:$0xff]   ;;  %v2064_v9 = vld [vmem:[#allocation6 + $0x34] ss:$8 sps:$4 sm:$0xff]  }
  0x99   : > { %635 = vmatprep.subr.bf16.mxu0 %v2040_v2  ;;  %682 = vmatprep.subr.bf16.mxu1 %v2040_v2  ;;  %v2067_v10 = vshrl.u32 %v419_v7, 7  ;;  %v2070_v11 = vld [vmem:[#allocation6 + $0x30] ss:$8 sps:$4 sm:$0xff]   ;;  %s2072_s24 = sld [smem:[#allocation2 + $0x3]]  ;;  %v2076_v12 = vld [vmem:[#allocation6 + $0x24] ss:$8 sps:$4 sm:$0xff]  }
  0x9a   : > { %v2081_v14 = vld [vmem:[#allocation6 + $0x20] ss:$8 sps:$4 sm:$0xff]   ;;  %v2085_v15 = vld [vmem:[#allocation6 + $0x14] ss:$8 sps:$4 sm:$0xff]   ;;  %v2088_v16 = vld [vmem:[#allocation6 + $0x10] ss:$8 sps:$4 sm:$0xff]  }
  0x9b   : > { %v425_v13 = vsub.s32 1, %v2067_v10  ;;  %v414_v17 = vld [vmem:[%s2027_s26] sm:$0xff]  ;;  %v2107_v25 = vld [vmem:[#allocation6 + $0xf4] ss:$8 sps:$4 sm:$0xff]   ;;  %v2114_v28 = vld [vmem:[#allocation6 + $0xf0] ss:$8 sps:$4 sm:$0xff]  }
  0x9c   : > { %636 = vmatpush1.bf16.msra.mxu0 %v2044_v3  ;;  %683 = vmatpush1.bf16.msra.mxu1 %v2044_v3  ;;  %v417_v18 = vld [vmem:[%s2224_s4] sm:$0x3]  ;;  %v2094_v19 = vld [vmem:[#allocation6 + $0x4] ss:$8 sps:$4 sm:$0xff]   ;;  %v416_v20 = vunpack.c.h.bf16 %v414_v17  ;;  %v2124_v31 = vld [vmem:[#allocation6 + $0xd4] ss:$8 sps:$4 sm:$0xff]   ;;  %v415_v39 = vunpack.c.l.bf16 %v414_v17 }
  0x9d   : > { %637 = vmatprep.subr.bf16.mxu0 %v2048_v4  ;;  %684 = vmatprep.subr.bf16.mxu1 %v2048_v4  ;;  %v426_v21 = vrot.slane %v417_v18, %v425_v13  ;;  %v2105_v24 = vld [vmem:[#allocation6] ss:$8 sps:$4 sm:$0xff]   ;;  %v2116_v29 = vld [vmem:[#allocation6 + $0xe4] ss:$8 sps:$4 sm:$0xff]   ;;  %v2131_v32 = vld [vmem:[#allocation6 + $0xd0] ss:$8 sps:$4 sm:$0xff]  }
  0x9e   : > { %v2122_v30 = vld [vmem:[#allocation6 + $0xe0] ss:$8 sps:$4 sm:$0xff]   ;;  %v1499_v33 = vld [vmem:[#allocation6 + $0xc4] ss:$8 sps:$4 sm:$0xff]   ;;  %v1502_v35 = vld [vmem:[#allocation6 + $0xb4] ss:$8 sps:$4 sm:$0xff]  }
  0x9f   : > { %v464_v22 = vstv %s2072_s24  ;;  %v2102_v23 = vmul.f32 %v426_v21, %v416_v20  ;;  %v1501_v34 = vld [vmem:[#allocation6 + $0xc0] ss:$8 sps:$4 sm:$0xff]   ;;  %v421_v36 = vsub.s32 0, %v2067_v10  ;;  %v1504_v37 = vld [vmem:[#allocation6 + $0xb0] ss:$8 sps:$4 sm:$0xff]   ;;  %s1273_s2 = sld [smem:[#allocation2 + $0x2]] }
  0xa0   : > { %638 = vmatpush1.bf16.msra.mxu0 %v2052_v5  ;;  %685 = vmatpush1.bf16.msra.mxu1 %v2052_v5  ;;  %v1505_v38 = vld [vmem:[#allocation6 + $0xa4] ss:$8 sps:$4 sm:$0xff]   ;;  %v1507_v41 = vld [vmem:[#allocation6 + $0xa0] ss:$8 sps:$4 sm:$0xff]   ;;  %v1508_v42 = vld [vmem:[#allocation6 + $0x94] ss:$8 sps:$4 sm:$0xff]  }
  0xa1   : > { %639 = vmatprep.subr.bf16.mxu0 %v2056_v6  ;;  %686 = vmatprep.subr.bf16.mxu1 %v2056_v6  ;;  %v466_v26 = vmul.f32 %v464_v22, %v2102_v23  ;;  %v422_v40 = vrot.slane %v417_v18, %v421_v36  ;;  %v1510_v44 = vld [vmem:[#allocation6 + $0x90] ss:$8 sps:$4 sm:$0xff]   ;;  %v1511_v45 = vld [vmem:[#allocation6 + $0x84] ss:$8 sps:$4 sm:$0xff]   ;;  %v1513_v47 = vld [vmem:[#allocation6 + $0x80] ss:$8 sps:$4 sm:$0xff]   ;;  %v769_v60 = vpack.c.bf16 %v2102_v23, %v2102_v23 }
  0xa2   : > { %v1514_v49 = vld [vmem:[#allocation7 + $0x78] sm:$0xff]   ;;  %v1516_v63 = vld [vmem:[#allocation7 + $0x70] sm:$0xff]   ;;  %v1533_v18 = vld [vmem:[#allocation9 + $0x60] ss:$8 sps:$4 sm:$0xff]   ;;  %s1306_s29 = sld [smem:[#allocation2 + $0x1]]  ;;  %s1271_s19 = sshll.u32 %s2024_s14, 4 }
  0xa3   : > { %v468_v27 = vpack.c.bf16 %v466_v26, %v466_v26  ;;  %v2141_v43 = vmul.f32 %v422_v40, %v415_v39  ;;  %v1515_v59 = vld [vmem:[#allocation7 + $0x38] sm:$0xff]   ;;  %v1524_v7 = vld [vmem:[#allocation7 + $0x50] sm:$0xff]   ;;  %s723_s23 = sld [smem:[#allocation2]]  ;;  %s1346_s22 = sshll.u32 %s1855_s11, 8 }
  0xa4   : > { %640 = vmatpush1.bf16.msra.mxu0 %v2060_v8  ;;  %687 = vmatpush1.bf16.msra.mxu1 %v2060_v8  ;;  %v1530_v17 = vld [vmem:[#allocation9 + $0x70] ss:$8 sps:$4 sm:$0xff]   ;;  %v1538_v20 = vld [vmem:[#allocation9 + $0x54] ss:$8 sps:$4 sm:$0xff]   ;;  %s412_s18 = scalar_lea.vmem [#allocation13], %s1271_s19  ;;  %s1116_s15 = scalar_lea.hbm %s2228_s8, %s1346_s22 }
  0xa5   : > { %641 = vmatprep.subr.bf16.mxu0 %v2064_v9  ;;  %688 = vmatprep.subr.bf16.mxu1 %v2064_v9  ;;  %v465_v46 = vmul.f32 %v464_v22, %v2141_v43  ;;  %v470_v50 = vstv %s1273_s2  ;;  %v1536_v21 = vld [vmem:[#allocation9 + $0x50] ss:$8 sps:$4 sm:$0xff]   ;;  %v1541_v22 = vld [vmem:[#allocation9 + $0x44] ss:$8 sps:$4 sm:$0xff]   ;;  %s1118_s6 = sshll.u32 %s412_s18, 4  ;;  %s1104_s26 = scalar_lea.sflag [#allocation4], %s2024_s14  ;;  %s1119_s6 = int_to_ptr.vmem [resolvable:$true] %s1118_s6 }
  0xa6   : > { %665 = vmatprep.mubr.bf16.mxu0 %v468_v27  ;;  %v471_v51 = vmul.f32 %v470_v50, %v2141_v43  ;;  %v472_v52 = vmul.f32 %v470_v50, %v2102_v23  ;;  %v1542_v26 = vld [vmem:[#allocation9 + $0x30] ss:$8 sps:$4 sm:$0xff]   ;;  %v1547_v27 = vld [vmem:[#allocation9 + $0x24] ss:$8 sps:$4 sm:$0xff]   ;;  %p2265_p7 = scmp.ne.s32.totalorder %s2249_s25, 0  ;;  %s1788_s24 = smov [#allocation13]  }
  0xa7   : > { %v467_v48 = vpack.c.bf16 %v465_v46, %v465_v46  ;;  %s1703_s11 = sshll.u32 %s1788_s24, 4  ;;  %s1704_s11 = int_to_ptr.vmem [resolvable:$false] %s1703_s11 }
  0xa8   : > { %642 = vmatpush1.bf16.msra.mxu0 %v2070_v11  ;;  %689 = vmatpush1.bf16.msra.mxu1 %v2070_v11  ;;  %s1705_s17 = scalar_lea.vmem %s1704_s11, 512  ;;  %p1706_p10 = scmp.lt.s32.totalorder %s1119_s6, %s1704_s11 }
  0xa9   : > { %643 = vmatprep.subr.bf16.mxu0 %v2076_v12  ;;  %690 = vmatprep.subr.bf16.mxu1 %v2076_v12 }
  0xac   : > { %644 = vmatpush1.bf16.msra.mxu0 %v2081_v14  ;;  %691 = vmatpush1.bf16.msra.mxu1 %v2081_v14 }
  0xad   : > { %645 = vmatprep.subr.bf16.mxu0 %v2085_v15  ;;  %692 = vmatprep.subr.bf16.mxu1 %v2085_v15 }
  0xb0   : > { %646 = vmatpush1.bf16.msra.mxu0 %v2088_v16  ;;  %693 = vmatpush1.bf16.msra.mxu1 %v2088_v16 }
  0xb1   : > { %647 = vmatprep.subr.bf16.mxu0 %v2094_v19  ;;  %694 = vmatprep.subr.bf16.mxu1 %v2094_v19 }
  0xb4   : > { %648 = vmatpush1.bf16.msra.mxu0 %v2105_v24  ;;  %695 = vmatpush1.bf16.msra.mxu1 %v2105_v24 }
  0xb5   : > { %649 = vmatprep.subr.bf16.mxu0 %v2107_v25  ;;  %696 = vmatprep.subr.bf16.mxu1 %v2107_v25 }
  0xb8   : > { %650 = vmatpush2.bf16.msra.mxu0 %v2114_v28  ;;  %697 = vmatpush2.bf16.msra.mxu1 %v2114_v28 }
  0xb9   : > { %651 = vmatprep.subr.bf16.mxu0 %v2116_v29  ;;  %698 = vmatprep.subr.bf16.mxu1 %v2116_v29 }
  0xbc   : > { %652 = vmatpush2.bf16.msra.mxu0 %v2122_v30  ;;  %699 = vmatpush2.bf16.msra.mxu1 %v2122_v30 }
  0xbd   : > { %653 = vmatprep.subr.bf16.mxu0 %v2124_v31  ;;  %700 = vmatprep.subr.bf16.mxu1 %v2124_v31 }
  0xc0   : > { %654 = vmatpush2.bf16.msra.mxu0 %v2131_v32  ;;  %701 = vmatpush2.bf16.msra.mxu1 %v2131_v32 }
  0xc1   : > { %655 = vmatprep.subr.bf16.mxu0 %v1499_v33  ;;  %702 = vmatprep.subr.bf16.mxu1 %v1499_v33 }
  0xc4   : > { %656 = vmatpush2.bf16.msra.mxu0 %v1501_v34  ;;  %703 = vmatpush2.bf16.msra.mxu1 %v1501_v34 }
  0xc5   : > { %657 = vmatprep.subr.bf16.mxu0 %v1502_v35  ;;  %704 = vmatprep.subr.bf16.mxu1 %v1502_v35 }
  0xc8   : > { %658 = vmatpush2.bf16.msra.mxu0 %v1504_v37  ;;  %705 = vmatpush2.bf16.msra.mxu1 %v1504_v37 }
  0xc9   : > { %659 = vmatprep.subr.bf16.mxu0 %v1505_v38  ;;  %706 = vmatprep.subr.bf16.mxu1 %v1505_v38 }
  0xcc   : > { %660 = vmatpush2.bf16.msra.mxu0 %v1507_v41  ;;  %707 = vmatpush2.bf16.msra.mxu1 %v1507_v41 }
  0xcd   : > { %661 = vmatprep.subr.bf16.mxu0 %v1508_v42  ;;  %708 = vmatprep.subr.bf16.mxu1 %v1508_v42 }
  0xd0   : > { %662 = vmatpush2.bf16.msra.mxu0 %v1510_v44  ;;  %709 = vmatpush2.bf16.msra.mxu1 %v1510_v44 }
  0xd1   : > { %663 = vmatprep.subr.bf16.mxu0 %v1511_v45  ;;  %710 = vmatprep.subr.bf16.mxu1 %v1511_v45 }
  0xd4   : > { %664 = vmatpush2.bf16.msra.mxu0 %v1513_v47  ;;  %711 = vmatpush2.bf16.msra.mxu1 %v1513_v47 }
  0xd5   : > { %727 = vmatprep.subr.bf16.mxu0 %v2035_v0  ;;  %1347 = vmatprep.subr.bf16.mxu1 %v1514_v49  ;;  %v1517_v0 = vld [vmem:[#allocation7 + $0x30] sm:$0xff]  }
  0xd7   : > { %666 = vmatmul.mubr.bf16.vlgmr.msra.gmra.mxu0 %v467_v48 }
  0xd8   : > { %728 = vmatpush1.bf16.msra.mxu0 %v2037_v1  ;;  %v1518_v1 = vld [vmem:[#allocation7 + $0x68] sm:$0xff]  }
  0xd9   : > { %729 = vmatprep.subr.bf16.mxu0 %v2040_v2  ;;  %v1519_v2 = vld [vmem:[#allocation7 + $0x28] sm:$0xff]  }
  0xdc   : > { %730 = vmatpush1.bf16.msra.mxu0 %v2044_v3  ;;  %v1520_v3 = vld [vmem:[#allocation7 + $0x60] sm:$0xff]  }
  0xdd   : > { %731 = vmatprep.subr.bf16.mxu0 %v2048_v4  ;;  %v1521_v4 = vld [vmem:[#allocation7 + $0x20] sm:$0xff]  }
  0xe0   : > { %732 = vmatpush1.bf16.msra.mxu0 %v2052_v5  ;;  %v1522_v5 = vld [vmem:[#allocation7 + $0x58] sm:$0xff]  }
  0xe1   : > { %733 = vmatprep.subr.bf16.mxu0 %v2056_v6  ;;  %v1523_v6 = vld [vmem:[#allocation7 + $0x18] sm:$0xff]  }
  0xe4   : > { %734 = vmatpush1.bf16.msra.mxu0 %v2060_v8  ;;  %v1525_v8 = vld [vmem:[#allocation7 + $0x10] sm:$0xff]  }
  0xe5   : > { %735 = vmatprep.subr.bf16.mxu0 %v2064_v9  ;;  %v1526_v9 = vld [vmem:[#allocation7 + $0x48] sm:$0xff]  }
  0xe8   : > { %736 = vmatpush1.bf16.msra.mxu0 %v2070_v11  ;;  %v1527_v11 = vld [vmem:[#allocation7 + $0x8] sm:$0xff]  }
  0xe9   : > { %737 = vmatprep.subr.bf16.mxu0 %v2076_v12  ;;  %v1528_v12 = vld [vmem:[#allocation7 + $0x40] sm:$0xff]  }
  0xec   : > { %738 = vmatpush1.bf16.msra.mxu0 %v2081_v14  ;;  %v1529_v14 = vld [vmem:[#allocation7] sm:$0xff]  }
  0xed   : > { %739 = vmatprep.subr.bf16.mxu0 %v2085_v15  ;;  %v768_v15 = vpack.c.bf16 %v2141_v43, %v2141_v43 }
  0xf0   : > { %740 = vmatpush1.bf16.msra.mxu0 %v2088_v16  ;;  %v1532_v16 = vld [vmem:[#allocation9 + $0x74] ss:$8 sps:$4 sm:$0xff]  }
  0xf1   : > { %741 = vmatprep.subr.bf16.mxu0 %v2094_v19  ;;  %v1535_v19 = vld [vmem:[#allocation9 + $0x64] ss:$8 sps:$4 sm:$0xff]  }
  0xf4   : > { %742 = vmatpush1.bf16.msra.mxu0 %v2105_v24  ;;  %v1539_v24 = vld [vmem:[#allocation9 + $0x40] ss:$8 sps:$4 sm:$0xff]  }
  0xf5   : > { %743 = vmatprep.subr.bf16.mxu0 %v2107_v25  ;;  %v1544_v25 = vld [vmem:[#allocation9 + $0x34] ss:$8 sps:$4 sm:$0xff]  }
  0xf8   : > { %744 = vmatpush2.bf16.msra.mxu0 %v2114_v28  ;;  %v1545_v28 = vld [vmem:[#allocation9 + $0x20] ss:$8 sps:$4 sm:$0xff]  }
  0xf9   : > { %745 = vmatprep.subr.bf16.mxu0 %v2116_v29  ;;  %v1550_v29 = vld [vmem:[#allocation9 + $0x14] ss:$8 sps:$4 sm:$0xff]  }
  0xfc   : > { %746 = vmatpush2.bf16.msra.mxu0 %v2122_v30  ;;  %v1548_v30 = vld [vmem:[#allocation9 + $0x10] ss:$8 sps:$4 sm:$0xff]  }
  0xfd   : > { %747 = vmatprep.subr.bf16.mxu0 %v2124_v31  ;;  %v1553_v31 = vld [vmem:[#allocation9 + $0x4] ss:$8 sps:$4 sm:$0xff]  }
 0x100   : > { %748 = vmatpush2.bf16.msra.mxu0 %v2131_v32  ;;  %v1551_v32 = vld [vmem:[#allocation9] ss:$8 sps:$4 sm:$0xff]  }
 0x101   : > { %749 = vmatprep.subr.bf16.mxu0 %v1499_v33  ;;  %v1787_v33 = vmov 0  }
 0x104   : > { %750 = vmatpush2.bf16.msra.mxu0 %v1501_v34  ;;  %v677_v34 = vstv %s1306_s29 }
 0x105   : > { %751 = vmatprep.subr.bf16.mxu0 %v1502_v35  ;;  %v678_v35 = vmul.f32 %v677_v34, %v2141_v43 }
 0x108   : > { %752 = vmatpush2.bf16.msra.mxu0 %v1504_v37  ;;  %v679_v37 = vmul.f32 %v677_v34, %v2102_v23 }
 0x109   : > { %753 = vmatprep.subr.bf16.mxu0 %v1505_v38 }
 0x10c   : > { %754 = vmatpush2.bf16.msra.mxu0 %v1507_v41 }
 0x10d   : > { %755 = vmatprep.subr.bf16.mxu0 %v1508_v42 }
 0x110   : > { %756 = vmatpush2.bf16.msra.mxu0 %v1510_v44 }
 0x111   : > { %757 = vmatprep.subr.bf16.mxu0 %v1511_v45 }
 0x114   : > { %758 = vmatpush2.bf16.msra.mxu0 %v1513_v47 }
 0x197   : > { %v667_v53 = vpop.f32.mrf.mxu0 }
 0x198   : > { %v668_v54 = vadd.f32 %v667_v53, %v471_v51 }
 0x199   : > { %v669_v55 = vpop.f32.mrf.mxu0 }
 0x19a   : > { %v670_v56 = vadd.f32 %v669_v55, %v472_v52  ;;  %v674_v61 = vpack.c.bf16 %v668_v54, %v668_v54 }
 0x19b   : > { %v671_v57 = vpop.f32.mrf.mxu0 }
 0x19c   : > { %v675_v58 = vpack.c.bf16 %v670_v56, %v670_v56  ;;  %v724_v57 = vstv %s723_s23 }
 0x19d   : > { %v672_v62 = vpop.f32.mrf.mxu0 }
 0x19e   : > { %712 = vmatprep.mubr.bf16.mxu1 %v675_v58  ;;  %v725_v58 = vmul.f32 %v724_v57, %v2141_v43 }
 0x19f   : > { %713 = vmatmul.mubr.bf16.vlgmr.msra.gmra.mxu1 %v674_v61 }
 0x1a0   : > { %1348 = vmatpush3.bf16.msra.mxu1 %v1515_v59  ;;  %930 = vmatprep.mubr.bf16.mxu1 %v769_v60  ;;  %v1078_v59 = vld [vmem:[%s2225_s5] sm:$0x3]  ;;  %v726_v60 = vmul.f32 %v724_v57, %v2102_v23 }
 0x1a1   : > { %1349 = vmatprep.subr.bf16.mxu1 %v1516_v63  ;;  %v1083_v62 = vrot.slane %v1078_v59, %v421_v36 }
 0x1a4   : > { %1350 = vmatpush3.bf16.msra.mxu1 %v1517_v0  ;;  %v1092_v0 = vld [vmem:[%s2033_s21] sm:$0xff]  ;;  %s1699_s21 = scalar_lea.vmem %s1119_s6, 256 }
 0x1a5   : > { %1351 = vmatprep.subr.bf16.mxu1 %v1518_v1  ;;  %p1700_p6 = scmp.ne.s32.totalorder %s1119_s6, %s1699_s21  ;;  %p1707_p4 = scmp.lt.s32.totalorder %s1705_s17, %s1699_s21 }
 0x1a7   : > { %p1701_p12 = pnand %p1700_p6, %p2265_p7  ;;  %p1708_p11 = por %p1707_p4, %p1706_p10 }
 0x1a8   : > { %1352 = vmatpush3.bf16.msra.mxu1 %v1519_v2 }
 0x1a9   : > { %1353 = vmatprep.subr.bf16.mxu1 %v1520_v3  ;;  %v1087_v3 = vrot.slane %v1078_v59, %v425_v13  ;;  %p1702_p13 = pneg %p1701_p12 }
 0x1ab   : > { %p1709_p8 = pnand %p1708_p11, %p1702_p13 }
 0x1ac   : > { %1354 = vmatpush3.bf16.msra.mxu1 %v1521_v4 }
 0x1ad   : > { %1355 = vmatprep.subr.bf16.mxu1 %v1522_v5  ;;  %v1093_v5 = vunpack.c.l.bf16 %v1092_v0 }
 0x1b0   : > { %1356 = vmatpush3.bf16.msra.mxu1 %v1523_v6 }
 0x1b1   : > { %1357 = vmatprep.subr.bf16.mxu1 %v1524_v7 }
 0x1b4   : > { %1358 = vmatpush3.bf16.msra.mxu1 %v1525_v8 }
 0x1b5   : > { %1359 = vmatprep.subr.bf16.mxu1 %v1526_v9  ;;  %v1094_v9 = vunpack.c.h.bf16 %v1092_v0 }
 0x1b8   : > { %1360 = vmatpush3.bf16.msra.mxu1 %v1527_v11 }
 0x1b9   : > { %1361 = vmatprep.subr.bf16.mxu1 %v1528_v12 }
 0x1bc   : > { %1362 = vmatpush3.bf16.msra.mxu1 %v1529_v14 }
 0x1bd   : > { %1035 = vmatprep.subr.bf16.mxu1 %v1532_v16 }
 0x1bf   : > { %931 = vmatmul.mubr.bf16.vlgmr.msra.gmra.mxu1 %v768_v15 }
 0x1c0   : > { %1036 = vmatpush1.bf16.msra.mxu1 %v1530_v17  ;;  %1067 = vmatprep.mubr.bf16.mxu1 %v1787_v33 }
 0x1c1   : > { %1037 = vmatprep.subr.bf16.mxu1 %v1535_v19 }
 0x1c4   : > { %1038 = vmatpush1.bf16.msra.mxu1 %v1533_v18 }
 0x1c5   : > { %1039 = vmatprep.subr.bf16.mxu1 %v1538_v20 }
 0x1c8   : > { %1040 = vmatpush1.bf16.msra.mxu1 %v1536_v21 }
 0x1c9   : > { %1041 = vmatprep.subr.bf16.mxu1 %v1541_v22 }
 0x1cc   : > { %1042 = vmatpush1.bf16.msra.mxu1 %v1539_v24 }
 0x1cd   : > { %1043 = vmatprep.subr.bf16.mxu1 %v1544_v25 }
 0x1d0   : > { %1044 = vmatpush1.bf16.msra.mxu1 %v1542_v26 }
 0x1d1   : > { %1045 = vmatprep.subr.bf16.mxu1 %v1547_v27 }
 0x1d4   : > { %1046 = vmatpush1.bf16.msra.mxu1 %v1545_v28 }
 0x1d5   : > { %1047 = vmatprep.subr.bf16.mxu1 %v1550_v29 }
 0x1d8   : > { %1048 = vmatpush1.bf16.msra.mxu1 %v1548_v30 }
 0x1d9   : > { %1049 = vmatprep.subr.bf16.mxu1 %v1553_v31 }
 0x1dc   : > { %1050 = vmatpush1.bf16.msra.mxu1 %v1551_v32 }
 0x25f   : > { %v714_v38 = vpop.f32.mrf.mxu1 }
 0x260   : > { %v715_v39 = vadd.f32 %v714_v38, %v678_v35 }
 0x261   : > { %v716_v40 = vpop.f32.mrf.mxu1 }
 0x262   : > { %v717_v41 = vadd.f32 %v716_v40, %v679_v37  ;;  %v721_v45 = vpack.c.bf16 %v715_v39, %v715_v39 }
 0x263   : > { %v718_v42 = vpop.f32.mrf.mxu1 }
 0x264   : > { %v722_v44 = vpack.c.bf16 %v717_v41, %v717_v41 }
 0x265   : > { %v719_v46 = vpop.f32.mrf.mxu1 }
 0x266   : > { %759 = vmatprep.mubr.bf16.mxu0 %v722_v44 }
 0x267   : > { %760 = vmatmul.mubr.bf16.vlgmr.msra.gmra.mxu0 %v721_v45 }
 0x27f   : > { %v1363_v47 = vpop.f32.mrf.mxu1 }
 0x281   : > { %v1364_v48 = vpop.f32.mrf.mxu1 }
 0x282   : > { %v1365_v49 = vadd.f32 %v1364_v48, %v1363_v47 }
 0x283   : > { %v1366_v50 = vpop.f32.mrf.mxu1 }
 0x284   : > { %v938_v51 = vpack.c.bf16 %v1365_v49, %v1365_v49 }
 0x285   : > { %v1367_v52 = vpop.f32.mrf.mxu1 }
 0x286   : > { %1068 = vmatmul.mubr.bf16.vlgmr.msra.gmra.mxu1 %v938_v51 }
 0x327   : > { %v761_v53 = vpop.f32.mrf.mxu0 }
 0x328   : > { %v762_v61 = vadd.f32 %v761_v53, %v725_v58 }
 0x329   : > { %v763_v54 = vpop.f32.mrf.mxu0 }
 0x32a   : > { %v764_v1 = vadd.f32 %v763_v54, %v726_v60 }
 0x32b   : > { %v765_v55 = vpop.f32.mrf.mxu0 }
 0x32d   : > { %v766_v56 = vpop.f32.mrf.mxu0 }
 0x346   : > { %v1069_v63 = vpop.f32.mrf.mxu1 }
 0x347   : > { %v1076_v2 = vadd.f32 %v1069_v63, %v762_v61 }
 0x348   : > { %v1071_v4 = vpop.f32.mrf.mxu1 }
 0x349   : > { %v1090_v43 = vmul.f32 %v1083_v62, %v1076_v2  ;;  %v1077_v6 = vadd.f32 %v1071_v4, %v764_v1 }
 0x34a   : > { %v1073_v7 = vpop.f32.mrf.mxu1 }
 0x34b   : > { %v1095_v8 = vadd.f32 1e+08, %v1090_v43  ;;  %v1091_v23 = vmul.f32 %v1087_v3, %v1077_v6 }
 0x34c   : > { %v1074_v11 = vpop.f32.mrf.mxu1 }
 0x34d   : > { %v1097_v36 = vmul.f32 %v1095_v8, %v1093_v5  ;;  %v1096_v12 = vadd.f32 1e+08, %v1091_v23 }
 0x34f   : > { %v1099_v14 = vsub.f32 %v1090_v43, %v1097_v36  ;;  %v1098_v10 = vmul.f32 %v1096_v12, %v1094_v9 }
 0x351   : > { %v1100_v13 = vsub.f32 %v1091_v23, %v1098_v10  ;;  %1101 = vst [vmem:[%s412_s18] sm:$0xff] %v1099_v14 }
 0x353   : > { %1102 = vst [vmem:[%s412_s18 + $0x8] sm:$0xff] %v1100_v13 }
 0x354   : > { %1712 = shalt.err (!%p1709_p8)
}
 0x355   : > { %s1713_s16 = scalar_lea.hbm %s1116_s15, 256  ;;  %s1717_s29 = scalar_lea.hbm %s2228_s8, 512 }
 0x356   : > { %p1714_p0 = scmp.ne.s32.totalorder %s1116_s15, %s1713_s16  ;;  %p1718_p3 = scmp.lt.s32.totalorder %s1116_s15, %s2228_s8 }
 0x357   : > { %p1719_p2 = scmp.lt.s32.totalorder %s1717_s29, %s1713_s16 }
 0x358   : > { %p1715_p5 = pnand %p1714_p0, %p2265_p7 }
 0x359   : > { %p1720_p1 = por %p1719_p2, %p1718_p3 }
 0x35a   : > { %p1716_p9 = pneg %p1715_p5 }
 0x35c   : > { %p1721_p6 = pnand %p1720_p1, %p1716_p9 }
 0x35e   : > { %1724 = shalt.err (!%p1721_p6)
}
 0x35f   : > { %1389 = dma.vmem_to_hbm [thread:$0]  (%p2265_p7), %s1119_s6, 256, %s1116_s15, %s1104_s26  }
 0x360 PF: > { %s1130_s13 = sand.u32 1, %s1763_s27   ;;  %p2266_p12 = scmp.ne.s32.totalorder %s2250_s9, 0 }
 0x361   : > { %p2267_p13 = scmp.ge.s32.totalorder %s1775_s30, 2  ;;  %s1131_s19 = scalar_lea.sflag [#allocation4], %s1130_s13 }
 0x363   : > { %p1412_p10 = pnand %p2267_p13, %p2266_p12 }
 0x365   : > { %p1413_p4 = pneg %p1412_p10 }
 0x367   : > { %1758 = dma.done.wait (%p1413_p4), %s1131_s19, 256  }
 0x368   : > { %1760 = vsyncadd (%p1413_p4), %s1131_s19, 4294967040  ;;  %s2268_s30 = sld [smem:[#allocation20_spill]]  ;;  %s2271_s27 = smov %s1767_s28 }
 0x369   : > { %s2269_s22 = sld [smem:[#allocation19_spill]] }
 0x36a   : > { %s2270_s29 = sld [smem:[#allocation21_spill]] }
 0x36e   : > { %p24_p11 = scmp.ge.s32.totalorder %s2268_s30, 4  }
 0x36f   : > { %s2272_s28 = smov %s2269_s22 }
 0x370   :  { %26 = sbr.rel (!%p24_p11) target bundleno = 11 (0xb), region = 126 }
 0x375   :  { %1136 = vsyncpa [#allocation3], 1 }
 0x376   :  { %1138 = vsyncpa [#allocation3 + $0x1], 1 }
 0x377   :  { %1139 = vsyncpa [#allocation8], 1 }
 0x378   :  { %1140 = vsyncpa [#allocation11], 1 }
 0x379   :  { %1142 = vsyncpa [#allocation11 + $0x1], 1 }
 0x37a   :  { %1143 = vsyncpa [#allocation4], 1 }
 0x37b   :  { %1145 = vsyncpa [#allocation4 + $0x1], 1 }
 0x37c   :  { %1146 = vsyncpa [#allocation5], 1 }
 0x37d   :  { %1148 = vsyncpa [#allocation5 + $0x1], 1 }

// kernel: tpu_custom_call.1
= control target key start
LH: loop header
LB: loop body
LE: loop exit
PB: predicated region body
PF: predicated region fallthrough
CT: control target
= control target key end

     0   :  { %s2220_s0 = inlined_call_operand.hbm [shape: f32[4], index: 0, kind: input, shape index: {}]   ;;  %s2221_s1 = inlined_call_operand.hbm [shape: bf16[256,256], index: 1, kind: input, shape index: {}]   ;;  %s2222_s2 = inlined_call_operand.hbm [shape: bf16[256,128], index: 2, kind: input, shape index: {}]   ;;  %s2223_s3 = inlined_call_operand.hbm [shape: bf16[128,256], index: 3, kind: input, shape index: {}]   ;;  %s2224_s4 = inlined_call_operand.vmem [shape: f32[1,256], index: 4, kind: input, shape index: {}]   ;;  %s2225_s5 = inlined_call_operand.vmem [shape: f32[1,256], index: 5, kind: input, shape index: {}]   ;;  %s2226_s6 = inlined_call_operand.hbm [shape: bf16[16,256], index: 6, kind: input, shape index: {}]   ;;  %s2227_s7 = inlined_call_operand.hbm [shape: bf16[16,256], index: 7, kind: input, shape index: {}]   ;;  %s2228_s8 = inlined_call_operand.hbm [shape: f32[16,256], index: 8, kind: output, shape index: {}]  }
   0x1   :  { %2240 = sst [smem:[#allocation22_spill]] %s2222_s2 }
   0x2   :  { %2241 = sst [smem:[#allocation23_spill]] %s2226_s6 }
   0x3   :  { %13 = vsyncpa [#allocation5], 0 }
   0x4   :  { %14 = vsyncpa [#allocation3], 0 }
   0x5   :  { %15 = vsyncpa [#allocation8], 0 }
   0x6   :  { %16 = vsyncpa [#allocation11], 0 }
   0x7   :  { %18 = vsyncpa [#allocation11 + $0x1], 0 }
   0x8   :  { %19 = vsyncpa [#allocation4], 0 }
   0x9   :  { %21 = vsyncpa [#allocation4 + $0x1], 0  ;;  %s1834_s27 = smov 0   ;;  %s1836_s28 = smov 0  }
   0xa   :  { %s1838_s29 = smov 0   ;;  %s1840_s30 = smov 0  }
   0xb LB: > { %2242 = sst [smem:[#allocation19_spill]] %s1771_s29  ;;  %s1777_s9 = smov [#allocation7]   ;;  %s1775_s30 = sphi %s1840_s30, %s2268_s30   ;;  %s1771_s29 = sphi %s1838_s29, %s2270_s29   ;;  %s1767_s28 = sphi %s1836_s28, %s2272_s28   ;;  %s1763_s27 = sphi %s1834_s27, %s2271_s27  }
   0xc   : > { %s270_s10 = sshll.u32 %s1777_s9, 4  ;;  %s1855_s11 = sadd.s32 4294967295, %s1775_s30   ;;  %s271_s10 = int_to_ptr.vmem [resolvable:$true] %s270_s10 }
   0xd   : > { %p1252_p0 = scmp.ge.s32.totalorder %s1775_s30, 1  ;;  %p2232_p1 = scmp.eq.s32.totalorder %s1855_s11, 0 }
   0xe   : > { %p236_p2 = scmp.lt.s32.totalorder %s1775_s30, 3  ;;  %s1251_s14 = sadd.s32 4294967294, %s1775_s30  }
   0xf   : > { %s1565_s15 = scalar_lea.vmem %s271_s10, 2048  ;;  %p1573_p11 = scmp.lt.s32.totalorder %s271_s10, %s271_s10 }
  0x10   : > { %p1860_p3 = pnand %p1252_p0, %p236_p2  ;;  %p1566_p8 = scmp.ne.s32.totalorder %s271_s10, %s1565_s15 }
  0x11   : > { %p1574_p12 = scmp.lt.s32.totalorder %s1565_s15, %s1565_s15 }
  0x12   : > { %s2243_s12 = scalar_select %p1860_p3, 1, 0 }
  0x13   : > { %p1391_p5 = pneg %p1860_p3  ;;  %p1575_p13 = por %p1574_p12, %p1573_p11 }
  0x15   : > { %p1869_p6 = pnand %p1391_p5, %p2232_p1 }
  0x17   : > { %s2244_s13 = scalar_select %p1869_p6, 1, 0 }
  0x18   : > { %p2229_p7 = pneg %p1869_p6 }
  0x1a   : > { %p1568_p9 = pnand %p1566_p8, %p2229_p7 }
  0x1c   : > { %p1569_p10 = pneg %p1568_p9 }
  0x1e   : > { %p1576_p0 = pnand %p1575_p13, %p1569_p10 }
  0x20   : > { %1579 = shalt.err (!%p1576_p0)
}
  0x21   : > { %s1778_s16 = smov 64   ;;  %s1779_s17 = smov 4  }
  0x22   : > { %s2245_s2 = sld [smem:[#allocation22_spill]]  ;;  %s1885_s20 = sadd.s32 1, %s1775_s30  }
  0x23   : > { %2246 = sst [smem:[#allocation20_spill]] %s1885_s20  ;;  %s160_s21 = sadd.s32 1, %s1771_s29 }
  0x24   : > { %s157_s22 = ssub.s32 %s1775_s30, %s1885_s20  ;;  %p167_p2 = scmp.ne.s32.totalorder %s1771_s29, %s1767_s28 }
  0x25   : > { %p158_p5 = scmp.eq.s32.totalorder %s157_s22, 0  ;;  %p168_p8 = scmp.eq.s32.totalorder %s1775_s30, 0 }
  0x26   : > { %p173_p9 = scmp.ne.s32.totalorder %s1767_s28, %s1763_s27  ;;  %p223_p10 = scmp.eq.s32.totalorder %s1855_s11, 1 }
  0x27   : > { %s1897_s23 = scalar_select %p158_p5, %s1771_s29, %s160_s21  }
  0x28   : > { %1400 = dma.hbm_to_vmem [thread:$0]  (!%p1869_p6), %s2245_s2, 2048, %s271_s10, [#allocation8], %s1778_s16, %s1778_s16, %s1779_s17  }
  0x29   : > { %2247 = sst [smem:[#allocation21_spill]] %s1897_s23  ;;  %p169_p11 = por %p168_p8, %p167_p2 }
  0x2a   : > { %p1901_p12 = por %p2232_p1, %p173_p9  ;;  %p1905_p13 = por %p223_p10, %p167_p2 }
  0x2b   : > { %p229_p0 = scmp.eq.s32.totalorder %s1251_s14, 1  ;;  %p1419_p4 = scmp.lt.s32.totalorder %s1775_s30, 2 }
  0x2c   : > { %s2248_s24 = scalar_select %p1901_p12, 1, 0 }
  0x2d   : > { %s2249_s25 = scalar_select %p1905_p13, 1, 0 }
  0x2e   : > { %s303_s26 = sand.u32 1, %s1775_s30   ;;  %p1911_p7 = por %p229_p0, %p173_p9 }
  0x2f   : > { %s305_s10 = sand.u32 1, %s1771_s29   ;;  %s2230_s15 = sshll.u32 %s1775_s30, 7 }
  0x30   : > { %s2250_s9 = scalar_select %p1911_p7, 1, 0 }
  0x31   : > { %s1917_s16 = sshll.u32 %s305_s10, 3  ;;  %s2251_s6 = sld [smem:[#allocation23_spill]] }
  0x32   : > { %p1926_p2 = pnand %p1419_p4, %p169_p11  ;;  %s307_s21 = scalar_lea.vmem [#allocation10], %s1917_s16 }
  0x33   : > { %s315_s22 = sshll.u32 %s307_s21, 4  ;;  %s1931_s10 = scalar_lea.sflag [#allocation11], %s303_s26  ;;  %s316_s22 = int_to_ptr.vmem [resolvable:$true] %s315_s22 }
  0x34   : > { %p1582_p8 = pneg %p1926_p2 }
  0x37   : > { %s1924_s19 = scalar_lea.hbm %s2251_s6, %s2230_s15  ;;  %s1585_s15 = scalar_lea.hbm %s2251_s6, 256 }
  0x38   : > { %s1580_s2 = scalar_lea.hbm %s1924_s19, 128  ;;  %p1586_p4 = scmp.lt.s32.totalorder %s1924_s19, %s2251_s6 }
  0x39   : > { %p1581_p5 = scmp.ne.s32.totalorder %s1924_s19, %s1580_s2  ;;  %p1587_p11 = scmp.lt.s32.totalorder %s1585_s15, %s1580_s2 }
  0x3b   : > { %p1583_p9 = pnand %p1582_p8, %p1581_p5  ;;  %p1588_p0 = por %p1587_p11, %p1586_p4 }
  0x3d   : > { %p1584_p10 = pneg %p1583_p9 }
  0x3f   : > { %p1589_p1 = pnand %p1588_p0, %p1584_p10 }
  0x41   : > { %1592 = shalt.err (!%p1589_p1)
}
  0x42   : > { %s1593_s26 = scalar_lea.vmem %s316_s22, 128  ;;  %s1780_s21 = smov [#allocation10]  }
  0x43   : > { %p1594_p7 = scmp.ne.s32.totalorder %s316_s22, %s1593_s26  ;;  %s1598_s20 = sshll.u32 %s1780_s21, 4  ;;  %s1599_s20 = int_to_ptr.vmem [resolvable:$false] %s1598_s20 }
  0x44   : > { %s1600_s17 = scalar_lea.vmem %s1599_s20, 256  ;;  %p1601_p9 = scmp.lt.s32.totalorder %s316_s22, %s1599_s20 }
  0x45   : > { %p1596_p13 = pnand %p1594_p7, %p1582_p8  ;;  %p1602_p12 = scmp.lt.s32.totalorder %s1600_s17, %s1593_s26 }
  0x47   : > { %p1597_p5 = pneg %p1596_p13  ;;  %p1603_p3 = por %p1602_p12, %p1601_p9 }
  0x49   : > { %p1604_p6 = pnand %p1603_p3, %p1597_p5 }
  0x4b   : > { %1607 = shalt.err (!%p1604_p6)
}
  0x4c   : > { %1407 = dma.hbm_to_vmem [thread:$0]  (!%p1926_p2), %s1924_s19, 128, %s316_s22, %s1931_s10  }
  0x4d   : > { %s2253_s2 = sshll.u32 %s1775_s30, 7  ;;  %s1781_s18 = smov [#allocation2]  }
  0x4e   : > { %s1959_s15 = scalar_lea.hbm %s2227_s7, %s2253_s2  ;;  %p2254_p1 = scmp.ne.s32.totalorder %s2244_s13, 0 }
  0x4f   : > { %s1782_s21 = smov [#allocation6]  }
  0x50   : > { %1394 = dma.hbm_to_smem (!%p2254_p1), %s2220_s0, 16, %s1781_s18, [#allocation5]  }
  0x51   : > { %s257_s17 = sshll.u32 %s1782_s21, 4  ;;  %p2255_p6 = pneg %p2254_p1  ;;  %s258_s17 = int_to_ptr.vmem [resolvable:$true] %s257_s17 }
  0x52   : > { %s1630_s6 = scalar_lea.vmem %s258_s17, 4096  ;;  %p1638_p13 = scmp.lt.s32.totalorder %s258_s17, %s258_s17 }
  0x53   : > { %p1631_p3 = scmp.ne.s32.totalorder %s258_s17, %s1630_s6  ;;  %p1639_p10 = scmp.lt.s32.totalorder %s1630_s6, %s1630_s6 }
  0x55   : > { %p1633_p7 = pnand %p1631_p3, %p2255_p6  ;;  %p1640_p4 = por %p1639_p10, %p1638_p13 }
  0x57   : > { %p1634_p12 = pneg %p1633_p7 }
  0x59   : > { %p1641_p11 = pnand %p1640_p4, %p1634_p12 }
  0x5b   : > { %1644 = shalt.err (!%p1641_p11)
}
  0x5c   : > { %s1783_s19 = smov 128   ;;  %s1784_s22 = smov 8  }
  0x5d   : > { %1397 = dma.hbm_to_vmem [thread:$0]  (!%p2254_p1), %s2221_s1, 4096, %s258_s17, [#allocation3], %s1783_s19, %s1783_s19, %s1784_s22  }
  0x5e   : > { %s1785_s23 = smov [#allocation9]   ;;  %s326_s20 = scalar_lea.vmem [#allocation12], %s1917_s16 }
  0x5f   : > { %s283_s18 = sshll.u32 %s1785_s23, 4  ;;  %s334_s26 = sshll.u32 %s326_s20, 4  ;;  %s284_s18 = int_to_ptr.vmem [resolvable:$true] %s283_s18  ;;  %s1975_s26 = int_to_ptr.vmem [resolvable:$true] %s334_s26 }
  0x60   : > { %s1656_s6 = scalar_lea.vmem %s284_s18, 2048  ;;  %p2256_p5 = pmov %p2255_p6 }
  0x61   : > { %p1657_p0 = scmp.ne.s32.totalorder %s284_s18, %s1656_s6  ;;  %p1664_p6 = scmp.lt.s32.totalorder %s284_s18, %s284_s18 }
  0x62   : > { %p1665_p7 = scmp.lt.s32.totalorder %s1656_s6, %s1656_s6 }
  0x63   : > { %p1659_p9 = pnand %p1657_p0, %p2256_p5 }
  0x64   : > { %p1666_p12 = por %p1665_p7, %p1664_p6 }
  0x65   : > { %p1660_p3 = pneg %p1659_p9 }
  0x67   : > { %p1667_p13 = pnand %p1666_p12, %p1660_p3 }
  0x69   : > { %1670 = shalt.err (!%p1667_p13)
}
  0x6a   : > { %1403 = dma.hbm_to_vmem [thread:$0]  (!%p2254_p1), %s2223_s3, 2048, %s284_s18, [#allocation8], %s1783_s19, %s1783_s19, %s1784_s22  }
  0x6b   : > { %s1671_s16 = scalar_lea.hbm %s1959_s15, 128  ;;  %s1676_s23 = scalar_lea.hbm %s2227_s7, 256 }
  0x6c   : > { %p1672_p10 = scmp.ne.s32.totalorder %s1959_s15, %s1671_s16  ;;  %p1677_p0 = scmp.lt.s32.totalorder %s1959_s15, %s2227_s7 }
  0x6d   : > { %p1678_p5 = scmp.lt.s32.totalorder %s1676_s23, %s1671_s16 }
  0x6e   : > { %p1674_p4 = pnand %p1672_p10, %p1582_p8 }
  0x6f   : > { %p1679_p9 = por %p1678_p5, %p1677_p0 }
  0x70   : > { %p1675_p11 = pneg %p1674_p4 }
  0x72   : > { %p1680_p3 = pnand %p1679_p9, %p1675_p11 }
  0x74   : > { %1683 = shalt.err (!%p1680_p3)
}
  0x75   : > { %s1684_s19 = scalar_lea.vmem %s1975_s26, 128  ;;  %s1786_s22 = smov [#allocation12]  }
  0x76   : > { %p1685_p1 = scmp.ne.s32.totalorder %s1975_s26, %s1684_s19  ;;  %s1689_s18 = sshll.u32 %s1786_s22, 4  ;;  %s1690_s18 = int_to_ptr.vmem [resolvable:$false] %s1689_s18 }
  0x77   : > { %s1691_s6 = scalar_lea.vmem %s1690_s18, 256  ;;  %p1692_p12 = scmp.lt.s32.totalorder %s1975_s26, %s1690_s18 }
  0x78   : > { %p1687_p6 = pnand %p1685_p1, %p1582_p8  ;;  %p1693_p13 = scmp.lt.s32.totalorder %s1691_s6, %s1684_s19 }
  0x7a   : > { %p1688_p7 = pneg %p1687_p6  ;;  %p1694_p10 = por %p1693_p13, %p1692_p12 }
  0x7c   : > { %p1695_p4 = pnand %p1694_p10, %p1688_p7 }
  0x7e   : > { %1698 = shalt.err (!%p1695_p4)
}
  0x7f   : > { %1410 = dma.hbm_to_vmem [thread:$0]  (!%p1926_p2), %s1959_s15, 128, %s1975_s26, %s1931_s10  }
  0x80   : > { %p2257_p11 = scmp.ne.s32.totalorder %s2243_s12, 0 }
  0x81   : > { %p2258_p8 = scmp.eq.s32.totalorder (!%p2257_p11), %s1855_s11, 0 }
  0x82   : > { %343 = sbr.rel (%p2257_p11) target bundleno = 864 (0x360), region = 52 }
  0x87   : > { %1742 = dma.done.wait (%p2258_p8), [#allocation5], 16   ;;  %p2259_p0 = pmov %p2258_p8 }
  0x89   : > { %1744 = vsyncadd (%p2259_p0), [#allocation5], 4294967280  ;;  %p2260_p5 = pmov %p2259_p0 }
  0x8a   : > { %p2261_p9 = pmov %p2259_p0 }
  0x8b   : > { %1746 = dma.done.wait (%p2260_p5), [#allocation3], 4096  }
  0x8c   : > { %1748 = vsyncadd (%p2261_p9), [#allocation3], 4294963200  ;;  %p2262_p3 = pmov %p2259_p0 }
  0x8d   : > { %p2263_p2 = pmov %p2259_p0 }
  0x8e   : > { %1750 = dma.done.wait (%p2262_p3), [#allocation8], 4096  }
  0x8f   : > { %1752 = vsyncadd (%p2263_p2), [#allocation8], 4294963200  ;;  %s361_s12 = sand.u32 1, %s1855_s11   ;;  %s2024_s14 = sand.u32 1, %s1767_s28  }
  0x90   : > { %s1269_s10 = sshll.u32 %s2024_s14, 3  ;;  %s362_s15 = scalar_lea.sflag [#allocation11], %s361_s12 }
  0x91   : > { %s2027_s26 = scalar_lea.vmem [#allocation10], %s1269_s10  ;;  %p2264_p1 = scmp.ne.s32.totalorder %s2248_s24, 0 }
  0x93   : > { %1754 = dma.done.wait (%p2264_p1), %s362_s15, 256  }
  0x94   : > { %1756 = vsyncadd (%p2264_p1), %s362_s15, 4294967040  ;;  %s2033_s21 = scalar_lea.vmem [#allocation12], %s1269_s10 }
  0x95   : > { %379 = sfence }
  0x96   : > { %v2035_v0 = vld [vmem:[#allocation6 + $0x74] ss:$8 sps:$4 sm:$0xff]   ;;  %v2037_v1 = vld [vmem:[#allocation6 + $0x70] ss:$8 sps:$4 sm:$0xff]   ;;  %v2040_v2 = vld [vmem:[#allocation6 + $0x64] ss:$8 sps:$4 sm:$0xff]   ;;  %v419_v7 = vlaneseq }
  0x97   : > { %633 = vmatprep.subr.bf16.mxu0 %v2035_v0  ;;  %680 = vmatprep.subr.bf16.mxu1 %v2035_v0  ;;  %v2044_v3 = vld [vmem:[#allocation6 + $0x60] ss:$8 sps:$4 sm:$0xff]   ;;  %v2048_v4 = vld [vmem:[#allocation6 + $0x54] ss:$8 sps:$4 sm:$0xff]   ;;  %v2052_v5 = vld [vmem:[#allocation6 + $0x50] ss:$8 sps:$4 sm:$0xff]  }
  0x98   : > { %634 = vmatpush1.bf16.msra.mxu0 %v2037_v1  ;;  %681 = vmatpush1.bf16.msra.mxu1 %v2037_v1  ;;  %v2056_v6 = vld [vmem:[#allocation6 + $0x44] ss:$8 sps:$4 sm:$0xff]   ;;  %v2060_v8 = vld [vmem:[#allocation6 + $0x40] ss:$8 sps:$4 sm:$0xff]   ;;  %v2064_v9 = vld [vmem:[#allocation6 + $0x34] ss:$8 sps:$4 sm:$0xff]  }
  0x99   : > { %635 = vmatprep.subr.bf16.mxu0 %v2040_v2  ;;  %682 = vmatprep.subr.bf16.mxu1 %v2040_v2  ;;  %v2067_v10 = vshrl.u32 %v419_v7, 7  ;;  %v2070_v11 = vld [vmem:[#allocation6 + $0x30] ss:$8 sps:$4 sm:$0xff]   ;;  %s2072_s24 = sld [smem:[#allocation2 + $0x3]]  ;;  %v2076_v12 = vld [vmem:[#allocation6 + $0x24] ss:$8 sps:$4 sm:$0xff]  }
  0x9a   : > { %v2081_v14 = vld [vmem:[#allocation6 + $0x20] ss:$8 sps:$4 sm:$0xff]   ;;  %v2085_v15 = vld [vmem:[#allocation6 + $0x14] ss:$8 sps:$4 sm:$0xff]   ;;  %v2088_v16 = vld [vmem:[#allocation6 + $0x10] ss:$8 sps:$4 sm:$0xff]  }
  0x9b   : > { %v425_v13 = vsub.s32 1, %v2067_v10  ;;  %v414_v17 = vld [vmem:[%s2027_s26] sm:$0xff]  ;;  %v2107_v25 = vld [vmem:[#allocation6 + $0xf4] ss:$8 sps:$4 sm:$0xff]   ;;  %v2114_v28 = vld [vmem:[#allocation6 + $0xf0] ss:$8 sps:$4 sm:$0xff]  }
  0x9c   : > { %636 = vmatpush1.bf16.msra.mxu0 %v2044_v3  ;;  %683 = vmatpush1.bf16.msra.mxu1 %v2044_v3  ;;  %v417_v18 = vld [vmem:[%s2224_s4] sm:$0x3]  ;;  %v2094_v19 = vld [vmem:[#allocation6 + $0x4] ss:$8 sps:$4 sm:$0xff]   ;;  %v416_v20 = vunpack.c.h.bf16 %v414_v17  ;;  %v2124_v31 = vld [vmem:[#allocation6 + $0xd4] ss:$8 sps:$4 sm:$0xff]   ;;  %v415_v39 = vunpack.c.l.bf16 %v414_v17 }
  0x9d   : > { %637 = vmatprep.subr.bf16.mxu0 %v2048_v4  ;;  %684 = vmatprep.subr.bf16.mxu1 %v2048_v4  ;;  %v426_v21 = vrot.slane %v417_v18, %v425_v13  ;;  %v2105_v24 = vld [vmem:[#allocation6] ss:$8 sps:$4 sm:$0xff]   ;;  %v2116_v29 = vld [vmem:[#allocation6 + $0xe4] ss:$8 sps:$4 sm:$0xff]   ;;  %v2131_v32 = vld [vmem:[#allocation6 + $0xd0] ss:$8 sps:$4 sm:$0xff]  }
  0x9e   : > { %v2122_v30 = vld [vmem:[#allocation6 + $0xe0] ss:$8 sps:$4 sm:$0xff]   ;;  %v1499_v33 = vld [vmem:[#allocation6 + $0xc4] ss:$8 sps:$4 sm:$0xff]   ;;  %v1502_v35 = vld [vmem:[#allocation6 + $0xb4] ss:$8 sps:$4 sm:$0xff]  }
  0x9f   : > { %v464_v22 = vstv %s2072_s24  ;;  %v2102_v23 = vmul.f32 %v426_v21, %v416_v20  ;;  %v1501_v34 = vld [vmem:[#allocation6 + $0xc0] ss:$8 sps:$4 sm:$0xff]   ;;  %v421_v36 = vsub.s32 0, %v2067_v10  ;;  %v1504_v37 = vld [vmem:[#allocation6 + $0xb0] ss:$8 sps:$4 sm:$0xff]   ;;  %s1273_s2 = sld [smem:[#allocation2 + $0x2]] }
  0xa0   : > { %638 = vmatpush1.bf16.msra.mxu0 %v2052_v5  ;;  %685 = vmatpush1.bf16.msra.mxu1 %v2052_v5  ;;  %v1505_v38 = vld [vmem:[#allocation6 + $0xa4] ss:$8 sps:$4 sm:$0xff]   ;;  %v1507_v41 = vld [vmem:[#allocation6 + $0xa0] ss:$8 sps:$4 sm:$0xff]   ;;  %v1508_v42 = vld [vmem:[#allocation6 + $0x94] ss:$8 sps:$4 sm:$0xff]  }
  0xa1   : > { %639 = vmatprep.subr.bf16.mxu0 %v2056_v6  ;;  %686 = vmatprep.subr.bf16.mxu1 %v2056_v6  ;;  %v466_v26 = vmul.f32 %v464_v22, %v2102_v23  ;;  %v422_v40 = vrot.slane %v417_v18, %v421_v36  ;;  %v1510_v44 = vld [vmem:[#allocation6 + $0x90] ss:$8 sps:$4 sm:$0xff]   ;;  %v1511_v45 = vld [vmem:[#allocation6 + $0x84] ss:$8 sps:$4 sm:$0xff]   ;;  %v1513_v47 = vld [vmem:[#allocation6 + $0x80] ss:$8 sps:$4 sm:$0xff]   ;;  %v769_v60 = vpack.c.bf16 %v2102_v23, %v2102_v23 }
  0xa2   : > { %v1514_v49 = vld [vmem:[#allocation7 + $0x78] sm:$0xff]   ;;  %v1516_v63 = vld [vmem:[#allocation7 + $0x70] sm:$0xff]   ;;  %v1533_v18 = vld [vmem:[#allocation9 + $0x60] ss:$8 sps:$4 sm:$0xff]   ;;  %s1306_s29 = sld [smem:[#allocation2 + $0x1]]  ;;  %s1271_s19 = sshll.u32 %s2024_s14, 4 }
  0xa3   : > { %v468_v27 = vpack.c.bf16 %v466_v26, %v466_v26  ;;  %v2141_v43 = vmul.f32 %v422_v40, %v415_v39  ;;  %v1515_v59 = vld [vmem:[#allocation7 + $0x38] sm:$0xff]   ;;  %v1524_v7 = vld [vmem:[#allocation7 + $0x50] sm:$0xff]   ;;  %s723_s23 = sld [smem:[#allocation2]]  ;;  %s1346_s22 = sshll.u32 %s1855_s11, 8 }
  0xa4   : > { %640 = vmatpush1.bf16.msra.mxu0 %v2060_v8  ;;  %687 = vmatpush1.bf16.msra.mxu1 %v2060_v8  ;;  %v1530_v17 = vld [vmem:[#allocation9 + $0x70] ss:$8 sps:$4 sm:$0xff]   ;;  %v1538_v20 = vld [vmem:[#allocation9 + $0x54] ss:$8 sps:$4 sm:$0xff]   ;;  %s412_s18 = scalar_lea.vmem [#allocation13], %s1271_s19  ;;  %s1116_s15 = scalar_lea.hbm %s2228_s8, %s1346_s22 }
  0xa5   : > { %641 = vmatprep.subr.bf16.mxu0 %v2064_v9  ;;  %688 = vmatprep.subr.bf16.mxu1 %v2064_v9  ;;  %v465_v46 = vmul.f32 %v464_v22, %v2141_v43  ;;  %v470_v50 = vstv %s1273_s2  ;;  %v1536_v21 = vld [vmem:[#allocation9 + $0x50] ss:$8 sps:$4 sm:$0xff]   ;;  %v1541_v22 = vld [vmem:[#allocation9 + $0x44] ss:$8 sps:$4 sm:$0xff]   ;;  %s1118_s6 = sshll.u32 %s412_s18, 4  ;;  %s1104_s26 = scalar_lea.sflag [#allocation4], %s2024_s14  ;;  %s1119_s6 = int_to_ptr.vmem [resolvable:$true] %s1118_s6 }
  0xa6   : > { %665 = vmatprep.mubr.bf16.mxu0 %v468_v27  ;;  %v471_v51 = vmul.f32 %v470_v50, %v2141_v43  ;;  %v472_v52 = vmul.f32 %v470_v50, %v2102_v23  ;;  %v1542_v26 = vld [vmem:[#allocation9 + $0x30] ss:$8 sps:$4 sm:$0xff]   ;;  %v1547_v27 = vld [vmem:[#allocation9 + $0x24] ss:$8 sps:$4 sm:$0xff]   ;;  %p2265_p7 = scmp.ne.s32.totalorder %s2249_s25, 0  ;;  %s1788_s24 = smov [#allocation13]  }
  0xa7   : > { %v467_v48 = vpack.c.bf16 %v465_v46, %v465_v46  ;;  %s1703_s11 = sshll.u32 %s1788_s24, 4  ;;  %s1704_s11 = int_to_ptr.vmem [resolvable:$false] %s1703_s11 }
  0xa8   : > { %642 = vmatpush1.bf16.msra.mxu0 %v2070_v11  ;;  %689 = vmatpush1.bf16.msra.mxu1 %v2070_v11  ;;  %s1705_s17 = scalar_lea.vmem %s1704_s11, 512  ;;  %p1706_p10 = scmp.lt.s32.totalorder %s1119_s6, %s1704_s11 }
  0xa9   : > { %643 = vmatprep.subr.bf16.mxu0 %v2076_v12  ;;  %690 = vmatprep.subr.bf16.mxu1 %v2076_v12 }
  0xac   : > { %644 = vmatpush1.bf16.msra.mxu0 %v2081_v14  ;;  %691 = vmatpush1.bf16.msra.mxu1 %v2081_v14 }
  0xad   : > { %645 = vmatprep.subr.bf16.mxu0 %v2085_v15  ;;  %692 = vmatprep.subr.bf16.mxu1 %v2085_v15 }
  0xb0   : > { %646 = vmatpush1.bf16.msra.mxu0 %v2088_v16  ;;  %693 = vmatpush1.bf16.msra.mxu1 %v2088_v16 }
  0xb1   : > { %647 = vmatprep.subr.bf16.mxu0 %v2094_v19  ;;  %694 = vmatprep.subr.bf16.mxu1 %v2094_v19 }
  0xb4   : > { %648 = vmatpush1.bf16.msra.mxu0 %v2105_v24  ;;  %695 = vmatpush1.bf16.msra.mxu1 %v2105_v24 }
  0xb5   : > { %649 = vmatprep.subr.bf16.mxu0 %v2107_v25  ;;  %696 = vmatprep.subr.bf16.mxu1 %v2107_v25 }
  0xb8   : > { %650 = vmatpush2.bf16.msra.mxu0 %v2114_v28  ;;  %697 = vmatpush2.bf16.msra.mxu1 %v2114_v28 }
  0xb9   : > { %651 = vmatprep.subr.bf16.mxu0 %v2116_v29  ;;  %698 = vmatprep.subr.bf16.mxu1 %v2116_v29 }
  0xbc   : > { %652 = vmatpush2.bf16.msra.mxu0 %v2122_v30  ;;  %699 = vmatpush2.bf16.msra.mxu1 %v2122_v30 }
  0xbd   : > { %653 = vmatprep.subr.bf16.mxu0 %v2124_v31  ;;  %700 = vmatprep.subr.bf16.mxu1 %v2124_v31 }
  0xc0   : > { %654 = vmatpush2.bf16.msra.mxu0 %v2131_v32  ;;  %701 = vmatpush2.bf16.msra.mxu1 %v2131_v32 }
  0xc1   : > { %655 = vmatprep.subr.bf16.mxu0 %v1499_v33  ;;  %702 = vmatprep.subr.bf16.mxu1 %v1499_v33 }
  0xc4   : > { %656 = vmatpush2.bf16.msra.mxu0 %v1501_v34  ;;  %703 = vmatpush2.bf16.msra.mxu1 %v1501_v34 }
  0xc5   : > { %657 = vmatprep.subr.bf16.mxu0 %v1502_v35  ;;  %704 = vmatprep.subr.bf16.mxu1 %v1502_v35 }
  0xc8   : > { %658 = vmatpush2.bf16.msra.mxu0 %v1504_v37  ;;  %705 = vmatpush2.bf16.msra.mxu1 %v1504_v37 }
  0xc9   : > { %659 = vmatprep.subr.bf16.mxu0 %v1505_v38  ;;  %706 = vmatprep.subr.bf16.mxu1 %v1505_v38 }
  0xcc   : > { %660 = vmatpush2.bf16.msra.mxu0 %v1507_v41  ;;  %707 = vmatpush2.bf16.msra.mxu1 %v1507_v41 }
  0xcd   : > { %661 = vmatprep.subr.bf16.mxu0 %v1508_v42  ;;  %708 = vmatprep.subr.bf16.mxu1 %v1508_v42 }
  0xd0   : > { %662 = vmatpush2.bf16.msra.mxu0 %v1510_v44  ;;  %709 = vmatpush2.bf16.msra.mxu1 %v1510_v44 }
  0xd1   : > { %663 = vmatprep.subr.bf16.mxu0 %v1511_v45  ;;  %710 = vmatprep.subr.bf16.mxu1 %v1511_v45 }
  0xd4   : > { %664 = vmatpush2.bf16.msra.mxu0 %v1513_v47  ;;  %711 = vmatpush2.bf16.msra.mxu1 %v1513_v47 }
  0xd5   : > { %727 = vmatprep.subr.bf16.mxu0 %v2035_v0  ;;  %1347 = vmatprep.subr.bf16.mxu1 %v1514_v49  ;;  %v1517_v0 = vld [vmem:[#allocation7 + $0x30] sm:$0xff]  }
  0xd7   : > { %666 = vmatmul.mubr.bf16.vlgmr.msra.gmra.mxu0 %v467_v48 }
  0xd8   : > { %728 = vmatpush1.bf16.msra.mxu0 %v2037_v1  ;;  %v1518_v1 = vld [vmem:[#allocation7 + $0x68] sm:$0xff]  }
  0xd9   : > { %729 = vmatprep.subr.bf16.mxu0 %v2040_v2  ;;  %v1519_v2 = vld [vmem:[#allocation7 + $0x28] sm:$0xff]  }
  0xdc   : > { %730 = vmatpush1.bf16.msra.mxu0 %v2044_v3  ;;  %v1520_v3 = vld [vmem:[#allocation7 + $0x60] sm:$0xff]  }
  0xdd   : > { %731 = vmatprep.subr.bf16.mxu0 %v2048_v4  ;;  %v1521_v4 = vld [vmem:[#allocation7 + $0x20] sm:$0xff]  }
  0xe0   : > { %732 = vmatpush1.bf16.msra.mxu0 %v2052_v5  ;;  %v1522_v5 = vld [vmem:[#allocation7 + $0x58] sm:$0xff]  }
  0xe1   : > { %733 = vmatprep.subr.bf16.mxu0 %v2056_v6  ;;  %v1523_v6 = vld [vmem:[#allocation7 + $0x18] sm:$0xff]  }
  0xe4   : > { %734 = vmatpush1.bf16.msra.mxu0 %v2060_v8  ;;  %v1525_v8 = vld [vmem:[#allocation7 + $0x10] sm:$0xff]  }
  0xe5   : > { %735 = vmatprep.subr.bf16.mxu0 %v2064_v9  ;;  %v1526_v9 = vld [vmem:[#allocation7 + $0x48] sm:$0xff]  }
  0xe8   : > { %736 = vmatpush1.bf16.msra.mxu0 %v2070_v11  ;;  %v1527_v11 = vld [vmem:[#allocation7 + $0x8] sm:$0xff]  }
  0xe9   : > { %737 = vmatprep.subr.bf16.mxu0 %v2076_v12  ;;  %v1528_v12 = vld [vmem:[#allocation7 + $0x40] sm:$0xff]  }
  0xec   : > { %738 = vmatpush1.bf16.msra.mxu0 %v2081_v14  ;;  %v1529_v14 = vld [vmem:[#allocation7] sm:$0xff]  }
  0xed   : > { %739 = vmatprep.subr.bf16.mxu0 %v2085_v15  ;;  %v768_v15 = vpack.c.bf16 %v2141_v43, %v2141_v43 }
  0xf0   : > { %740 = vmatpush1.bf16.msra.mxu0 %v2088_v16  ;;  %v1532_v16 = vld [vmem:[#allocation9 + $0x74] ss:$8 sps:$4 sm:$0xff]  }
  0xf1   : > { %741 = vmatprep.subr.bf16.mxu0 %v2094_v19  ;;  %v1535_v19 = vld [vmem:[#allocation9 + $0x64] ss:$8 sps:$4 sm:$0xff]  }
  0xf4   : > { %742 = vmatpush1.bf16.msra.mxu0 %v2105_v24  ;;  %v1539_v24 = vld [vmem:[#allocation9 + $0x40] ss:$8 sps:$4 sm:$0xff]  }
  0xf5   : > { %743 = vmatprep.subr.bf16.mxu0 %v2107_v25  ;;  %v1544_v25 = vld [vmem:[#allocation9 + $0x34] ss:$8 sps:$4 sm:$0xff]  }
  0xf8   : > { %744 = vmatpush2.bf16.msra.mxu0 %v2114_v28  ;;  %v1545_v28 = vld [vmem:[#allocation9 + $0x20] ss:$8 sps:$4 sm:$0xff]  }
  0xf9   : > { %745 = vmatprep.subr.bf16.mxu0 %v2116_v29  ;;  %v1550_v29 = vld [vmem:[#allocation9 + $0x14] ss:$8 sps:$4 sm:$0xff]  }
  0xfc   : > { %746 = vmatpush2.bf16.msra.mxu0 %v2122_v30  ;;  %v1548_v30 = vld [vmem:[#allocation9 + $0x10] ss:$8 sps:$4 sm:$0xff]  }
  0xfd   : > { %747 = vmatprep.subr.bf16.mxu0 %v2124_v31  ;;  %v1553_v31 = vld [vmem:[#allocation9 + $0x4] ss:$8 sps:$4 sm:$0xff]  }
 0x100   : > { %748 = vmatpush2.bf16.msra.mxu0 %v2131_v32  ;;  %v1551_v32 = vld [vmem:[#allocation9] ss:$8 sps:$4 sm:$0xff]  }
 0x101   : > { %749 = vmatprep.subr.bf16.mxu0 %v1499_v33  ;;  %v1787_v33 = vmov 0  }
 0x104   : > { %750 = vmatpush2.bf16.msra.mxu0 %v1501_v34  ;;  %v677_v34 = vstv %s1306_s29 }
 0x105   : > { %751 = vmatprep.subr.bf16.mxu0 %v1502_v35  ;;  %v678_v35 = vmul.f32 %v677_v34, %v2141_v43 }
 0x108   : > { %752 = vmatpush2.bf16.msra.mxu0 %v1504_v37  ;;  %v679_v37 = vmul.f32 %v677_v34, %v2102_v23 }
 0x109   : > { %753 = vmatprep.subr.bf16.mxu0 %v1505_v38 }
 0x10c   : > { %754 = vmatpush2.bf16.msra.mxu0 %v1507_v41 }
 0x10d   : > { %755 = vmatprep.subr.bf16.mxu0 %v1508_v42 }
 0x110   : > { %756 = vmatpush2.bf16.msra.mxu0 %v1510_v44 }
 0x111   : > { %757 = vmatprep.subr.bf16.mxu0 %v1511_v45 }
 0x114   : > { %758 = vmatpush2.bf16.msra.mxu0 %v1513_v47 }
 0x197   : > { %v667_v53 = vpop.f32.mrf.mxu0 }
 0x198   : > { %v668_v54 = vadd.f32 %v667_v53, %v471_v51 }
 0x199   : > { %v669_v55 = vpop.f32.mrf.mxu0 }
 0x19a   : > { %v670_v56 = vadd.f32 %v669_v55, %v472_v52  ;;  %v674_v61 = vpack.c.bf16 %v668_v54, %v668_v54 }
 0x19b   : > { %v671_v57 = vpop.f32.mrf.mxu0 }
 0x19c   : > { %v675_v58 = vpack.c.bf16 %v670_v56, %v670_v56  ;;  %v724_v57 = vstv %s723_s23 }
 0x19d   : > { %v672_v62 = vpop.f32.mrf.mxu0 }
 0x19e   : > { %712 = vmatprep.mubr.bf16.mxu1 %v675_v58  ;;  %v725_v58 = vmul.f32 %v724_v57, %v2141_v43 }
 0x19f   : > { %713 = vmatmul.mubr.bf16.vlgmr.msra.gmra.mxu1 %v674_v61 }
 0x1a0   : > { %1348 = vmatpush3.bf16.msra.mxu1 %v1515_v59  ;;  %930 = vmatprep.mubr.bf16.mxu1 %v769_v60  ;;  %v1078_v59 = vld [vmem:[%s2225_s5] sm:$0x3]  ;;  %v726_v60 = vmul.f32 %v724_v57, %v2102_v23 }
 0x1a1   : > { %1349 = vmatprep.subr.bf16.mxu1 %v1516_v63  ;;  %v1083_v62 = vrot.slane %v1078_v59, %v421_v36 }
 0x1a4   : > { %1350 = vmatpush3.bf16.msra.mxu1 %v1517_v0  ;;  %v1092_v0 = vld [vmem:[%s2033_s21] sm:$0xff]  ;;  %s1699_s21 = scalar_lea.vmem %s1119_s6, 256 }
 0x1a5   : > { %1351 = vmatprep.subr.bf16.mxu1 %v1518_v1  ;;  %p1700_p6 = scmp.ne.s32.totalorder %s1119_s6, %s1699_s21  ;;  %p1707_p4 = scmp.lt.s32.totalorder %s1705_s17, %s1699_s21 }
 0x1a7   : > { %p1701_p12 = pnand %p1700_p6, %p2265_p7  ;;  %p1708_p11 = por %p1707_p4, %p1706_p10 }
 0x1a8   : > { %1352 = vmatpush3.bf16.msra.mxu1 %v1519_v2 }
 0x1a9   : > { %1353 = vmatprep.subr.bf16.mxu1 %v1520_v3  ;;  %v1087_v3 = vrot.slane %v1078_v59, %v425_v13  ;;  %p1702_p13 = pneg %p1701_p12 }
 0x1ab   : > { %p1709_p8 = pnand %p1708_p11, %p1702_p13 }
 0x1ac   : > { %1354 = vmatpush3.bf16.msra.mxu1 %v1521_v4 }
 0x1ad   : > { %1355 = vmatprep.subr.bf16.mxu1 %v1522_v5  ;;  %v1093_v5 = vunpack.c.l.bf16 %v1092_v0 }
 0x1b0   : > { %1356 = vmatpush3.bf16.msra.mxu1 %v1523_v6 }
 0x1b1   : > { %1357 = vmatprep.subr.bf16.mxu1 %v1524_v7 }
 0x1b4   : > { %1358 = vmatpush3.bf16.msra.mxu1 %v1525_v8 }
 0x1b5   : > { %1359 = vmatprep.subr.bf16.mxu1 %v1526_v9  ;;  %v1094_v9 = vunpack.c.h.bf16 %v1092_v0 }
 0x1b8   : > { %1360 = vmatpush3.bf16.msra.mxu1 %v1527_v11 }
 0x1b9   : > { %1361 = vmatprep.subr.bf16.mxu1 %v1528_v12 }
 0x1bc   : > { %1362 = vmatpush3.bf16.msra.mxu1 %v1529_v14 }
 0x1bd   : > { %1035 = vmatprep.subr.bf16.mxu1 %v1532_v16 }
 0x1bf   : > { %931 = vmatmul.mubr.bf16.vlgmr.msra.gmra.mxu1 %v768_v15 }
 0x1c0   : > { %1036 = vmatpush1.bf16.msra.mxu1 %v1530_v17  ;;  %1067 = vmatprep.mubr.bf16.mxu1 %v1787_v33 }
 0x1c1   : > { %1037 = vmatprep.subr.bf16.mxu1 %v1535_v19 }
 0x1c4   : > { %1038 = vmatpush1.bf16.msra.mxu1 %v1533_v18 }
 0x1c5   : > { %1039 = vmatprep.subr.bf16.mxu1 %v1538_v20 }
 0x1c8   : > { %1040 = vmatpush1.bf16.msra.mxu1 %v1536_v21 }
 0x1c9   : > { %1041 = vmatprep.subr.bf16.mxu1 %v1541_v22 }
 0x1cc   : > { %1042 = vmatpush1.bf16.msra.mxu1 %v1539_v24 }
 0x1cd   : > { %1043 = vmatprep.subr.bf16.mxu1 %v1544_v25 }
 0x1d0   : > { %1044 = vmatpush1.bf16.msra.mxu1 %v1542_v26 }
 0x1d1   : > { %1045 = vmatprep.subr.bf16.mxu1 %v1547_v27 }
 0x1d4   : > { %1046 = vmatpush1.bf16.msra.mxu1 %v1545_v28 }
 0x1d5   : > { %1047 = vmatprep.subr.bf16.mxu1 %v1550_v29 }
 0x1d8   : > { %1048 = vmatpush1.bf16.msra.mxu1 %v1548_v30 }
 0x1d9   : > { %1049 = vmatprep.subr.bf16.mxu1 %v1553_v31 }
 0x1dc   : > { %1050 = vmatpush1.bf16.msra.mxu1 %v1551_v32 }
 0x25f   : > { %v714_v38 = vpop.f32.mrf.mxu1 }
 0x260   : > { %v715_v39 = vadd.f32 %v714_v38, %v678_v35 }
 0x261   : > { %v716_v40 = vpop.f32.mrf.mxu1 }
 0x262   : > { %v717_v41 = vadd.f32 %v716_v40, %v679_v37  ;;  %v721_v45 = vpack.c.bf16 %v715_v39, %v715_v39 }
 0x263   : > { %v718_v42 = vpop.f32.mrf.mxu1 }
 0x264   : > { %v722_v44 = vpack.c.bf16 %v717_v41, %v717_v41 }
 0x265   : > { %v719_v46 = vpop.f32.mrf.mxu1 }
 0x266   : > { %759 = vmatprep.mubr.bf16.mxu0 %v722_v44 }
 0x267   : > { %760 = vmatmul.mubr.bf16.vlgmr.msra.gmra.mxu0 %v721_v45 }
 0x27f   : > { %v1363_v47 = vpop.f32.mrf.mxu1 }
 0x281   : > { %v1364_v48 = vpop.f32.mrf.mxu1 }
 0x282   : > { %v1365_v49 = vadd.f32 %v1364_v48, %v1363_v47 }
 0x283   : > { %v1366_v50 = vpop.f32.mrf.mxu1 }
 0x284   : > { %v938_v51 = vpack.c.bf16 %v1365_v49, %v1365_v49 }
 0x285   : > { %v1367_v52 = vpop.f32.mrf.mxu1 }
 0x286   : > { %1068 = vmatmul.mubr.bf16.vlgmr.msra.gmra.mxu1 %v938_v51 }
 0x327   : > { %v761_v53 = vpop.f32.mrf.mxu0 }
 0x328   : > { %v762_v61 = vadd.f32 %v761_v53, %v725_v58 }
 0x329   : > { %v763_v54 = vpop.f32.mrf.mxu0 }
 0x32a   : > { %v764_v1 = vadd.f32 %v763_v54, %v726_v60 }
 0x32b   : > { %v765_v55 = vpop.f32.mrf.mxu0 }
 0x32d   : > { %v766_v56 = vpop.f32.mrf.mxu0 }
 0x346   : > { %v1069_v63 = vpop.f32.mrf.mxu1 }
 0x347   : > { %v1076_v2 = vadd.f32 %v1069_v63, %v762_v61 }
 0x348   : > { %v1071_v4 = vpop.f32.mrf.mxu1 }
 0x349   : > { %v1090_v43 = vmul.f32 %v1083_v62, %v1076_v2  ;;  %v1077_v6 = vadd.f32 %v1071_v4, %v764_v1 }
 0x34a   : > { %v1073_v7 = vpop.f32.mrf.mxu1 }
 0x34b   : > { %v1095_v8 = vadd.f32 1e+08, %v1090_v43  ;;  %v1091_v23 = vmul.f32 %v1087_v3, %v1077_v6 }
 0x34c   : > { %v1074_v11 = vpop.f32.mrf.mxu1 }
 0x34d   : > { %v1097_v36 = vmul.f32 %v1095_v8, %v1093_v5  ;;  %v1096_v12 = vadd.f32 1e+08, %v1091_v23 }
 0x34f   : > { %v1099_v14 = vsub.f32 %v1090_v43, %v1097_v36  ;;  %v1098_v10 = vmul.f32 %v1096_v12, %v1094_v9 }
 0x351   : > { %v1100_v13 = vsub.f32 %v1091_v23, %v1098_v10  ;;  %1101 = vst [vmem:[%s412_s18] sm:$0xff] %v1099_v14 }
 0x353   : > { %1102 = vst [vmem:[%s412_s18 + $0x8] sm:$0xff] %v1100_v13 }
 0x354   : > { %1712 = shalt.err (!%p1709_p8)
}
 0x355   : > { %s1713_s16 = scalar_lea.hbm %s1116_s15, 256  ;;  %s1717_s29 = scalar_lea.hbm %s2228_s8, 512 }
 0x356   : > { %p1714_p0 = scmp.ne.s32.totalorder %s1116_s15, %s1713_s16  ;;  %p1718_p3 = scmp.lt.s32.totalorder %s1116_s15, %s2228_s8 }
 0x357   : > { %p1719_p2 = scmp.lt.s32.totalorder %s1717_s29, %s1713_s16 }
 0x358   : > { %p1715_p5 = pnand %p1714_p0, %p2265_p7 }
 0x359   : > { %p1720_p1 = por %p1719_p2, %p1718_p3 }
 0x35a   : > { %p1716_p9 = pneg %p1715_p5 }
 0x35c   : > { %p1721_p6 = pnand %p1720_p1, %p1716_p9 }
 0x35e   : > { %1724 = shalt.err (!%p1721_p6)
}
 0x35f   : > { %1389 = dma.vmem_to_hbm [thread:$0]  (%p2265_p7), %s1119_s6, 256, %s1116_s15, %s1104_s26  }
 0x360 PF: > { %s1130_s13 = sand.u32 1, %s1763_s27   ;;  %p2266_p12 = scmp.ne.s32.totalorder %s2250_s9, 0 }
 0x361   : > { %p2267_p13 = scmp.ge.s32.totalorder %s1775_s30, 2  ;;  %s1131_s19 = scalar_lea.sflag [#allocation4], %s1130_s13 }
 0x363   : > { %p1412_p10 = pnand %p2267_p13, %p2266_p12 }
 0x365   : > { %p1413_p4 = pneg %p1412_p10 }
 0x367   : > { %1758 = dma.done.wait (%p1413_p4), %s1131_s19, 256  }
 0x368   : > { %1760 = vsyncadd (%p1413_p4), %s1131_s19, 4294967040  ;;  %s2268_s30 = sld [smem:[#allocation20_spill]]  ;;  %s2271_s27 = smov %s1767_s28 }
 0x369   : > { %s2269_s22 = sld [smem:[#allocation19_spill]] }
 0x36a   : > { %s2270_s29 = sld [smem:[#allocation21_spill]] }
 0x36e   : > { %p24_p11 = scmp.ge.s32.totalorder %s2268_s30, 4  }
 0x36f   : > { %s2272_s28 = smov %s2269_s22 }
 0x370   :  { %26 = sbr.rel (!%p24_p11) target bundleno = 11 (0xb), region = 126 }
 0x375   :  { %1136 = vsyncpa [#allocation3], 1 }
 0x376   :  { %1138 = vsyncpa [#allocation3 + $0x1], 1 }
 0x377   :  { %1139 = vsyncpa [#allocation8], 1 }
 0x378   :  { %1140 = vsyncpa [#allocation11], 1 }
 0x379   :  { %1142 = vsyncpa [#allocation11 + $0x1], 1 }
 0x37a   :  { %1143 = vsyncpa [#allocation4], 1 }
 0x37b   :  { %1145 = vsyncpa [#allocation4 + $0x1], 1 }
 0x37c   :  { %1146 = vsyncpa [#allocation5], 1 }
 0x37d   :  { %1148 = vsyncpa [#allocation5 + $0x1], 1 }

</bundles_post_ra>
